<compile_context>
chip_gen: v5e
topology: v5e:2x2
jax: 0.10.0
libtpu: 0.0.40
codegen_flags: <defaults>
</compile_context>

<pallas_src>
import jax
import jax.numpy as jnp
from jax import lax
from jax.experimental import pallas as pl
from jax.experimental.pallas import tpu as pltpu


def _round_up(a: int, m: int) -> int:
    return ((a + m - 1) // m) * m


# ---------------------------------------------------------------------------
# Kernel
# ---------------------------------------------------------------------------
def rnn_head_kernel(x_ref, wih_ref, whh_ref, b_rnn_ref, wout_ref, bout_ref,
                    o_ref, xproj_ref, h_ref):
    """One (batch-tile, n-tile) grid step.

    x_ref:     (TB, S, E)  batch-major input block (no wrapper transpose)
    wih_ref:   (E, H)      W_ih^T
    whh_ref:   (H, H)      W_hh^T
    b_rnn_ref: (1, H)      b_ih + b_hh (precombined)
    wout_ref:  (H, TN)     W_out^T tile (N tiled across grid axis 1)
    bout_ref:  (1, TN)
    o_ref:     (TB, TN)    lane-dense output tile
    xproj_ref: (S, TB, H)  VMEM scratch: time-major projected inputs
    h_ref:     (TB, H)     VMEM scratch: final hidden state, persists across
                           the inner N-tile grid axis
    """
    TB, S, E = x_ref.shape
    H = whh_ref.shape[0]
    ni = pl.program_id(1)

    # The recurrence depends only on the batch tile: run it on the first N tile
    # and reuse h_ref for every subsequent N tile of the output head.
    @pl.when(ni == 0)
    def _recurrence():
        wih = wih_ref[...]
        b_rnn = b_rnn_ref[...]

        if S % 8 == 0 and TB * S <= 512:
            # Small tile: hoist the input projection into ONE MXU matmul over
            # all (batch, time) rows, then lay it out time-major in VMEM with
            # S cheap row stores (hidden under the matmul).
            x2 = x_ref[...].reshape(TB * S, E)
            xp = jnp.dot(x2, wih, preferred_element_type=jnp.float32) + b_rnn
            xp3 = xp.reshape(TB, S, H)
            for t in range(S):
                xproj_ref[t] = xp3[:, t, :]
        else:
            # Large batch tile: a per-step projection already streams >= TB
            # rows through the MXU and keeps the live temporary bounded.
            for t in range(S):
                xproj_ref[t] = (jnp.dot(x_ref[:, t, :], wih,
                                        preferred_element_type=jnp.float32)
                                + b_rnn)

        whh = whh_ref[...]

        # Serial recurrence: only the (TB, H) x (H, H) matmul + tanh remain
        # on the critical path.
        def step(t, h):
            pre = xproj_ref[t] + jnp.dot(h, whh,
                                         preferred_element_type=jnp.float32)
            return jnp.tanh(pre)

        h0 = jnp.zeros((TB, H), dtype=jnp.float32)
        h_ref[...] = lax.fori_loop(0, S, step, h0, unroll=True)

    # Output head for this N tile: lane-dense (TB, TN) store.
    logits = jnp.dot(h_ref[...], wout_ref[...],
                     preferred_element_type=jnp.float32) + bout_ref[...]
    o_ref[...] = logits.astype(o_ref.dtype)


# ---------------------------------------------------------------------------
# Tile selection helpers
# ---------------------------------------------------------------------------
def _vmem_bytes(TB, S, E, H, TN):
    """Rough per-block VMEM footprint in bytes (f32, conservative buffering)."""
    f = 4
    return f * (2 * TB * S * E            # x block (double buffered)
                + S * TB * H              # xproj scratch
                + TB * H                  # h scratch
                + 2 * TB * TN             # output block (double buffered)
                + 2 * (E * H + H * H + H)     # RNN weights (worst case 2x)
                + 2 * (H * TN + TN))          # head weight tile (2x)


def _choose_batch_tile(B8, S, E, H, TN, budget_bytes=40 << 20, cap=256):
    """Largest multiple of 8 (<= cap, <= padded batch) that fits the budget."""
    best = 8
    tb = 8
    top = min(cap, B8)
    while tb <= top and _vmem_bytes(tb, S, E, H, TN) <= budget_bytes:
        best = tb
        tb += 8
    return best


# ---------------------------------------------------------------------------
# Wrapper
# ---------------------------------------------------------------------------
def sequential_model_forward(x, params, *, batch_tile=None, n_tile=None):
    """x: (B, S, E) float32 -> (B, n_items) float32 logits."""
    wih_t, whh_t, b_rnn, wout_t, b_out = params
    B, S, E = x.shape
    H = whh_t.shape[0]
    N = wout_t.shape[1]

    # ---- Output-head tiling over n_items (lane-dense, VMEM bounded).
    if n_tile is None:
        TN = _round_up(N, 128) if N <= 512 else 512
    else:
        TN = max(128, _round_up(n_tile, 128))
    N_pad = _round_up(N, TN)

    # ---- Batch tile under a VMEM budget (multiple of 8 so in-kernel reshapes
    #      stay layout-free).
    B8 = _round_up(B, 8)
    if batch_tile is None:
        TB = _choose_batch_tile(B8, S, E, H, TN)
    else:
        TB = max(8, _round_up(batch_tile, 8))
    TB = min(TB, B8)
    B_pad = _round_up(B, TB)

    # ---- Pad operands (padded batch rows / vocab lanes are sliced off below).
    x_p = jnp.pad(x, ((0, B_pad - B), (0, 0), (0, 0))) if B_pad != B else x
    wout_p = jnp.pad(wout_t, ((0, 0), (0, N_pad - N))) if N_pad != N else wout_t
    bout_p = jnp.pad(b_out, ((0, 0), (0, N_pad - N))) if N_pad != N else b_out

    grid = (B_pad // TB, N_pad // TN)

    flops = (2 * B_pad * S * E * H          # input projection
             + 2 * B_pad * S * H * H        # recurrence
             + 2 * B_pad * H * N_pad)       # output head
    bytes_accessed = 4 * (B_pad * S * E + E * H + H * H + H
                          + H * N_pad + N_pad + B_pad * N_pad)
    cost = pl.CostEstimate(flops=flops,
                           transcendentals=B_pad * S * H,
                           bytes_accessed=bytes_accessed)

    est = _vmem_bytes(TB, S, E, H, TN)
    cp_kwargs = dict(dimension_semantics=("parallel", "arbitrary"))
    if est > (12 << 20):
        # Raise the scoped-VMEM limit when large tiles need it; keep below the
        # 64 MiB physical VMEM of v7x.
        cp_kwargs["vmem_limit_bytes"] = int(min(est * 3 // 2 + (4 << 20), 60 << 20))
    compiler_params = pltpu.CompilerParams(**cp_kwargs)

    def _spec(shape, index_map, *, single_buffer=False):
        # Constant-index weights only need one VMEM buffer; fall back to the
        # default (double-buffered) spec if this jax lacks pipeline_mode.
        if single_buffer and hasattr(pl, "Buffered"):
            try:
                return pl.BlockSpec(shape, index_map,
                                    pipeline_mode=pl.Buffered(1))
            except TypeError:
                pass
        return pl.BlockSpec(shape, index_map)

    def _build(single_buffer_weights):
        in_specs = [
            _spec((TB, S, E), lambda b, n: (b, 0, 0)),            # x (batch-major)
            _spec((E, H), lambda b, n: (0, 0),
                  single_buffer=single_buffer_weights),           # W_ih^T
            _spec((H, H), lambda b, n: (0, 0),
                  single_buffer=single_buffer_weights),           # W_hh^T
            _spec((1, H), lambda b, n: (0, 0),
                  single_buffer=single_buffer_weights),           # b_ih + b_hh
            _spec((H, TN), lambda b, n: (0, n)),                  # W_out^T tile
            _spec((1, TN), lambda b, n: (0, n)),                  # b_out tile
        ]
        return pl.pallas_call(
            rnn_head_kernel,
            out_shape=jax.ShapeDtypeStruct((B_pad, N_pad), jnp.float32),
            grid_spec=pltpu.PrefetchScalarGridSpec(
                num_scalar_prefetch=0,
                grid=grid,
                in_specs=in_specs,
                out_specs=pl.BlockSpec((TB, TN), lambda b, n: (b, n)),
                scratch_shapes=[pltpu.VMEM((S, TB, H), jnp.float32),
                                pltpu.VMEM((TB, H), jnp.float32)],
            ),
            compiler_params=compiler_params,
            cost_estimate=cost,
        )

    args = (x_p, wih_t, whh_t, b_rnn, wout_p, bout_p)
    try:
        out = _build(True)(*args)
    except Exception:
        # pl.Buffered(1) unsupported by this jax build -> default buffering.
        out = _build(False)(*args)

    return out[:B, :N]


# ---------------------------------------------------------------------------
# Parameters + pure-JAX reference
# ---------------------------------------------------------------------------
def make_params(key, n_items, embedding_dim, hidden_dim):
    """Deterministic synthetic params matching nn.RNN + nn.Linear shapes."""
    k = jax.random.split(key, 6)
    s_rnn = 1.0 / jnp.sqrt(hidden_dim)
    s_out = 1.0 / jnp.sqrt(hidden_dim)
    w_ih = jax.random.uniform(k[0], (hidden_dim, embedding_dim), jnp.float32, -s_rnn, s_rnn)
    w_hh = jax.random.uniform(k[1], (hidden_dim, hidden_dim), jnp.float32, -s_rnn, s_rnn)
    b_ih = jax.random.uniform(k[2], (hidden_dim,), jnp.float32, -s_rnn, s_rnn)
    b_hh = jax.random.uniform(k[3], (hidden_dim,), jnp.float32, -s_rnn, s_rnn)
    w_out = jax.random.uniform(k[4], (n_items, hidden_dim), jnp.float32, -s_out, s_out)
    b_out = jax.random.uniform(k[5], (n_items,), jnp.float32, -s_out, s_out)

    # Pre-transpose / combine for the kernel.
    wih_t = w_ih.T                                   # (E, H)
    whh_t = w_hh.T                                   # (H, H)
    b_rnn = (b_ih + b_hh).reshape(1, hidden_dim)     # (1, H)
    wout_t = w_out.T                                 # (H, N)
    b_out2 = b_out.reshape(1, n_items)               # (1, N)
    return (wih_t, whh_t, b_rnn, wout_t, b_out2)


def reference_forward(x, params):
    """Pure-JAX reference of the PyTorch forward (for verification)."""
    wih_t, whh_t, b_rnn, wout_t, b_out = params
    B, S, E = x.shape
    H = whh_t.shape[0]
    h = jnp.zeros((B, H), jnp.float32)
    for t in range(S):
        h = jnp.tanh(x[:, t, :] @ wih_t + h @ whh_t + b_rnn)
    return h @ wout_t + b_out


# ---------------------------------------------------------------------------
# Demo / self-check
# ---------------------------------------------------------------------------
if __name__ == "__main__":
    key = jax.random.PRNGKey(0)
    n_items = 200            # > 128 so the output head spans multiple N tiles
    embedding_dim = 64
    hidden_dim = 128
    batch, seq = 2, 8

    k_x, k_x2, k_p = jax.random.split(key, 3)
    params = make_params(k_p, n_items, embedding_dim, hidden_dim)

    # Check 1: tiny batch (TB=8, hoisted-projection path), n_tile=128 so the
    # N-tiled head + persistent-h reuse across N tiles is exercised.
    x = jax.random.normal(k_x, (batch, seq, embedding_dim), jnp.float32)
    out = jax.block_until_ready(sequential_model_forward(x, params, n_tile=128))
    ref = reference_forward(x, params)
    assert out.shape == (batch, n_items)
    assert jnp.allclose(out, ref, atol=1e-4, rtol=1e-4)

    # Check 2: larger batch (auto batch tile = 80 -> per-step projection path,
    # padded batch rows, default head tiling).
    x2 = jax.random.normal(k_x2, (77, seq, embedding_dim), jnp.float32)
    out2 = jax.block_until_ready(sequential_model_forward(x2, params))
    ref2 = reference_forward(x2, params)
    assert out2.shape == (77, n_items)
    assert jnp.allclose(out2, ref2, atol=1e-4, rtol=1e-4)

    print("KERNEL_OK")
</pallas_src>

<mosaic_0001>
module attributes {stable_mosaic.version = 11 : i64} {
  func.func @rnn_head_kernel(%arg0: i32, %arg1: i32, %arg2: memref<8x8x64xf32, #tpu.memory_space<vmem>>, %arg3: memref<64x128xf32, #tpu.memory_space<vmem>>, %arg4: memref<128x128xf32, #tpu.memory_space<vmem>>, %arg5: memref<1x128xf32, #tpu.memory_space<vmem>>, %arg6: memref<128x128xf32, #tpu.memory_space<vmem>>, %arg7: memref<1x128xf32, #tpu.memory_space<vmem>>, %arg8: memref<8x128xf32, #tpu.memory_space<vmem>>, %arg9: memref<8x8x128xf32, #tpu.memory_space<vmem>>, %arg10: memref<8x128xf32, #tpu.memory_space<vmem>>) attributes {dimension_semantics = [#tpu.dimension_semantics<parallel>, #tpu.dimension_semantics<arbitrary>], iteration_bounds = array<i64: 1, 2>, scalar_prefetch = 0 : i64, scratch_operands = 2 : i64, tpu.core_type = #tpu.core_type<tc>, window_params = [{transform_indices = @transform_0, window_bounds = array<i64: 8, 8, 64>}, {pipeline_mode = #tpu.pipeline_mode<synchronous>, transform_indices = @transform_1, window_bounds = array<i64: 64, 128>}, {pipeline_mode = #tpu.pipeline_mode<synchronous>, transform_indices = @transform_2, window_bounds = array<i64: 128, 128>}, {pipeline_mode = #tpu.pipeline_mode<synchronous>, transform_indices = @transform_3, window_bounds = array<i64: 1, 128>}, {transform_indices = @transform_4, window_bounds = array<i64: 128, 128>}, {transform_indices = @transform_5, window_bounds = array<i64: 1, 128>}, {transform_indices = @transform_6, window_bounds = array<i64: 8, 128>}]} {
    %c0_i32 = arith.constant 0 : i32
    %0 = arith.cmpi eq, %arg1, %c0_i32 : i32
    %1 = arith.extui %0 : i1 to i32
    %c0_i32_0 = arith.constant 0 : i32
    %2 = arith.cmpi ne, %1, %c0_i32_0 : i32
    scf.if %2 {
      %c0_8 = arith.constant 0 : index
      %c0_9 = arith.constant 0 : index
      %10 = vector.load %arg3[%c0_8, %c0_9] : memref<64x128xf32, #tpu.memory_space<vmem>>, vector<64x128xf32>
      %c0_10 = arith.constant 0 : index
      %c0_11 = arith.constant 0 : index
      %11 = vector.load %arg5[%c0_10, %c0_11] : memref<1x128xf32, #tpu.memory_space<vmem>>, vector<1x128xf32>
      %c0_12 = arith.constant 0 : index
      %c0_13 = arith.constant 0 : index
      %c0_14 = arith.constant 0 : index
      %12 = vector.load %arg2[%c0_12, %c0_13, %c0_14] : memref<8x8x64xf32, #tpu.memory_space<vmem>>, vector<8x8x64xf32>
      %13 = vector.shape_cast %12 : vector<8x8x64xf32> to vector<64x64xf32>
      %cst_15 = arith.constant dense<0.000000e+00> : vector<64x128xf32>
      %14 = tpu.matmul %13, %10, %cst_15 {dimension_numbers = #tpu.dot_dimension_numbers<[1], [0], [0], [1], [0, 0, 1, 1], [], []>} : vector<64x64xf32>, vector<64x128xf32>, vector<64x128xf32> -> vector<64x128xf32>
      %15 = vector.broadcast %11 : vector<1x128xf32> to vector<64x128xf32>
      %16 = arith.addf %14, %15 : vector<64x128xf32>
      %17 = vector.shape_cast %16 : vector<64x128xf32> to vector<8x8x128xf32>
      %18 = vector.extract_strided_slice %17 {offsets = [0, 0, 0], sizes = [8, 1, 128], strides = [1, 1, 1]} : vector<8x8x128xf32> to vector<8x1x128xf32>
      %19 = vector.shape_cast %18 : vector<8x1x128xf32> to vector<8x128xf32>
      %c0_16 = arith.constant 0 : index
      %c0_17 = arith.constant 0 : index
      %c0_18 = arith.constant 0 : index
      %20 = vector.load %arg9[%c0_16, %c0_17, %c0_18] : memref<8x8x128xf32, #tpu.memory_space<vmem>>, vector<1x8x128xf32>
      %21 = vector.shape_cast %20 : vector<1x8x128xf32> to vector<8x128xf32>
      %22 = vector.shape_cast %19 : vector<8x128xf32> to vector<1x8x128xf32>
      tpu.vector_store %arg9[%c0_16, %c0_17, %c0_18], %22 {strides = array<i32>} : memref<8x8x128xf32, #tpu.memory_space<vmem>>, vector<1x8x128xf32>,
      %23 = vector.extract_strided_slice %17 {offsets = [0, 1, 0], sizes = [8, 1, 128], strides = [1, 1, 1]} : vector<8x8x128xf32> to vector<8x1x128xf32>
      %24 = vector.shape_cast %23 : vector<8x1x128xf32> to vector<8x128xf32>
      %c1 = arith.constant 1 : index
      %c0_19 = arith.constant 0 : index
      %c0_20 = arith.constant 0 : index
      %25 = vector.load %arg9[%c1, %c0_19, %c0_20] : memref<8x8x128xf32, #tpu.memory_space<vmem>>, vector<1x8x128xf32>
      %26 = vector.shape_cast %25 : vector<1x8x128xf32> to vector<8x128xf32>
      %27 = vector.shape_cast %24 : vector<8x128xf32> to vector<1x8x128xf32>
      tpu.vector_store %arg9[%c1, %c0_19, %c0_20], %27 {strides = array<i32>} : memref<8x8x128xf32, #tpu.memory_space<vmem>>, vector<1x8x128xf32>,
      %28 = vector.extract_strided_slice %17 {offsets = [0, 2, 0], sizes = [8, 1, 128], strides = [1, 1, 1]} : vector<8x8x128xf32> to vector<8x1x128xf32>
      %29 = vector.shape_cast %28 : vector<8x1x128xf32> to vector<8x128xf32>
      %c2 = arith.constant 2 : index
      %c0_21 = arith.constant 0 : index
      %c0_22 = arith.constant 0 : index
      %30 = vector.load %arg9[%c2, %c0_21, %c0_22] : memref<8x8x128xf32, #tpu.memory_space<vmem>>, vector<1x8x128xf32>
      %31 = vector.shape_cast %30 : vector<1x8x128xf32> to vector<8x128xf32>
      %32 = vector.shape_cast %29 : vector<8x128xf32> to vector<1x8x128xf32>
      tpu.vector_store %arg9[%c2, %c0_21, %c0_22], %32 {strides = array<i32>} : memref<8x8x128xf32, #tpu.memory_space<vmem>>, vector<1x8x128xf32>,
      %33 = vector.extract_strided_slice %17 {offsets = [0, 3, 0], sizes = [8, 1, 128], strides = [1, 1, 1]} : vector<8x8x128xf32> to vector<8x1x128xf32>
      %34 = vector.shape_cast %33 : vector<8x1x128xf32> to vector<8x128xf32>
      %c3 = arith.constant 3 : index
      %c0_23 = arith.constant 0 : index
      %c0_24 = arith.constant 0 : index
      %35 = vector.load %arg9[%c3, %c0_23, %c0_24] : memref<8x8x128xf32, #tpu.memory_space<vmem>>, vector<1x8x128xf32>
      %36 = vector.shape_cast %35 : vector<1x8x128xf32> to vector<8x128xf32>
      %37 = vector.shape_cast %34 : vector<8x128xf32> to vector<1x8x128xf32>
      tpu.vector_store %arg9[%c3, %c0_23, %c0_24], %37 {strides = array<i32>} : memref<8x8x128xf32, #tpu.memory_space<vmem>>, vector<1x8x128xf32>,
      %38 = vector.extract_strided_slice %17 {offsets = [0, 4, 0], sizes = [8, 1, 128], strides = [1, 1, 1]} : vector<8x8x128xf32> to vector<8x1x128xf32>
      %39 = vector.shape_cast %38 : vector<8x1x128xf32> to vector<8x128xf32>
      %c4 = arith.constant 4 : index
      %c0_25 = arith.constant 0 : index
      %c0_26 = arith.constant 0 : index
      %40 = vector.load %arg9[%c4, %c0_25, %c0_26] : memref<8x8x128xf32, #tpu.memory_space<vmem>>, vector<1x8x128xf32>
      %41 = vector.shape_cast %40 : vector<1x8x128xf32> to vector<8x128xf32>
      %42 = vector.shape_cast %39 : vector<8x128xf32> to vector<1x8x128xf32>
      tpu.vector_store %arg9[%c4, %c0_25, %c0_26], %42 {strides = array<i32>} : memref<8x8x128xf32, #tpu.memory_space<vmem>>, vector<1x8x128xf32>,
      %43 = vector.extract_strided_slice %17 {offsets = [0, 5, 0], sizes = [8, 1, 128], strides = [1, 1, 1]} : vector<8x8x128xf32> to vector<8x1x128xf32>
      %44 = vector.shape_cast %43 : vector<8x1x128xf32> to vector<8x128xf32>
      %c5 = arith.constant 5 : index
      %c0_27 = arith.constant 0 : index
      %c0_28 = arith.constant 0 : index
      %45 = vector.load %arg9[%c5, %c0_27, %c0_28] : memref<8x8x128xf32, #tpu.memory_space<vmem>>, vector<1x8x128xf32>
      %46 = vector.shape_cast %45 : vector<1x8x128xf32> to vector<8x128xf32>
      %47 = vector.shape_cast %44 : vector<8x128xf32> to vector<1x8x128xf32>
      tpu.vector_store %arg9[%c5, %c0_27, %c0_28], %47 {strides = array<i32>} : memref<8x8x128xf32, #tpu.memory_space<vmem>>, vector<1x8x128xf32>,
      %48 = vector.extract_strided_slice %17 {offsets = [0, 6, 0], sizes = [8, 1, 128], strides = [1, 1, 1]} : vector<8x8x128xf32> to vector<8x1x128xf32>
      %49 = vector.shape_cast %48 : vector<8x1x128xf32> to vector<8x128xf32>
      %c6 = arith.constant 6 : index
      %c0_29 = arith.constant 0 : index
      %c0_30 = arith.constant 0 : index
      %50 = vector.load %arg9[%c6, %c0_29, %c0_30] : memref<8x8x128xf32, #tpu.memory_space<vmem>>, vector<1x8x128xf32>
      %51 = vector.shape_cast %50 : vector<1x8x128xf32> to vector<8x128xf32>
      %52 = vector.shape_cast %49 : vector<8x128xf32> to vector<1x8x128xf32>
      tpu.vector_store %arg9[%c6, %c0_29, %c0_30], %52 {strides = array<i32>} : memref<8x8x128xf32, #tpu.memory_space<vmem>>, vector<1x8x128xf32>,
      %53 = vector.extract_strided_slice %17 {offsets = [0, 7, 0], sizes = [8, 1, 128], strides = [1, 1, 1]} : vector<8x8x128xf32> to vector<8x1x128xf32>
      %54 = vector.shape_cast %53 : vector<8x1x128xf32> to vector<8x128xf32>
      %c7 = arith.constant 7 : index
      %c0_31 = arith.constant 0 : index
      %c0_32 = arith.constant 0 : index
      %55 = vector.load %arg9[%c7, %c0_31, %c0_32] : memref<8x8x128xf32, #tpu.memory_space<vmem>>, vector<1x8x128xf32>
      %56 = vector.shape_cast %55 : vector<1x8x128xf32> to vector<8x128xf32>
      %57 = vector.shape_cast %54 : vector<8x128xf32> to vector<1x8x128xf32>
      tpu.vector_store %arg9[%c7, %c0_31, %c0_32], %57 {strides = array<i32>} : memref<8x8x128xf32, #tpu.memory_space<vmem>>, vector<1x8x128xf32>,
      %c0_33 = arith.constant 0 : index
      %c0_34 = arith.constant 0 : index
      %58 = vector.load %arg4[%c0_33, %c0_34] : memref<128x128xf32, #tpu.memory_space<vmem>>, vector<128x128xf32>
      %cst_35 = arith.constant 0.000000e+00 : f32
      %59 = vector.broadcast %cst_35 : f32 to vector<8x128xf32>
      %c0_i32_36 = arith.constant 0 : i32
      %60 = arith.index_cast %c0_i32_36 : i32 to index
      %c0_37 = arith.constant 0 : index
      %c0_38 = arith.constant 0 : index
      %61 = vector.load %arg9[%60, %c0_37, %c0_38] : memref<8x8x128xf32, #tpu.memory_space<vmem>>, vector<1x8x128xf32>
      %62 = vector.shape_cast %61 : vector<1x8x128xf32> to vector<8x128xf32>
      %cst_39 = arith.constant dense<0.000000e+00> : vector<8x128xf32>
      %63 = tpu.matmul %59, %58, %cst_39 {dimension_numbers = #tpu.dot_dimension_numbers<[1], [0], [0], [1], [0, 0, 1, 1], [], []>} : vector<8x128xf32>, vector<128x128xf32>, vector<8x128xf32> -> vector<8x128xf32>
      %64 = arith.addf %62, %63 : vector<8x128xf32>
      %65 = math.tanh %64 : vector<8x128xf32>
      %c1_i32 = arith.constant 1 : i32
      %66 = arith.index_cast %c1_i32 : i32 to index
      %c0_40 = arith.constant 0 : index
      %c0_41 = arith.constant 0 : index
      %67 = vector.load %arg9[%66, %c0_40, %c0_41] : memref<8x8x128xf32, #tpu.memory_space<vmem>>, vector<1x8x128xf32>
      %68 = vector.shape_cast %67 : vector<1x8x128xf32> to vector<8x128xf32>
      %cst_42 = arith.constant dense<0.000000e+00> : vector<8x128xf32>
      %69 = tpu.matmul %65, %58, %cst_42 {dimension_numbers = #tpu.dot_dimension_numbers<[1], [0], [0], [1], [0, 0, 1, 1], [], []>} : vector<8x128xf32>, vector<128x128xf32>, vector<8x128xf32> -> vector<8x128xf32>
      %70 = arith.addf %68, %69 : vector<8x128xf32>
      %71 = math.tanh %70 : vector<8x128xf32>
      %c2_i32 = arith.constant 2 : i32
      %72 = arith.index_cast %c2_i32 : i32 to index
      %c0_43 = arith.constant 0 : index
      %c0_44 = arith.constant 0 : index
      %73 = vector.load %arg9[%72, %c0_43, %c0_44] : memref<8x8x128xf32, #tpu.memory_space<vmem>>, vector<1x8x128xf32>
      %74 = vector.shape_cast %73 : vector<1x8x128xf32> to vector<8x128xf32>
      %cst_45 = arith.constant dense<0.000000e+00> : vector<8x128xf32>
      %75 = tpu.matmul %71, %58, %cst_45 {dimension_numbers = #tpu.dot_dimension_numbers<[1], [0], [0], [1], [0, 0, 1, 1], [], []>} : vector<8x128xf32>, vector<128x128xf32>, vector<8x128xf32> -> vector<8x128xf32>
      %76 = arith.addf %74, %75 : vector<8x128xf32>
      %77 = math.tanh %76 : vector<8x128xf32>
      %c3_i32 = arith.constant 3 : i32
      %78 = arith.index_cast %c3_i32 : i32 to index
      %c0_46 = arith.constant 0 : index
      %c0_47 = arith.constant 0 : index
      %79 = vector.load %arg9[%78, %c0_46, %c0_47] : memref<8x8x128xf32, #tpu.memory_space<vmem>>, vector<1x8x128xf32>
      %80 = vector.shape_cast %79 : vector<1x8x128xf32> to vector<8x128xf32>
      %cst_48 = arith.constant dense<0.000000e+00> : vector<8x128xf32>
      %81 = tpu.matmul %77, %58, %cst_48 {dimension_numbers = #tpu.dot_dimension_numbers<[1], [0], [0], [1], [0, 0, 1, 1], [], []>} : vector<8x128xf32>, vector<128x128xf32>, vector<8x128xf32> -> vector<8x128xf32>
      %82 = arith.addf %80, %81 : vector<8x128xf32>
      %83 = math.tanh %82 : vector<8x128xf32>
      %c4_i32 = arith.constant 4 : i32
      %84 = arith.index_cast %c4_i32 : i32 to index
      %c0_49 = arith.constant 0 : index
      %c0_50 = arith.constant 0 : index
      %85 = vector.load %arg9[%84, %c0_49, %c0_50] : memref<8x8x128xf32, #tpu.memory_space<vmem>>, vector<1x8x128xf32>
      %86 = vector.shape_cast %85 : vector<1x8x128xf32> to vector<8x128xf32>
      %cst_51 = arith.constant dense<0.000000e+00> : vector<8x128xf32>
      %87 = tpu.matmul %83, %58, %cst_51 {dimension_numbers = #tpu.dot_dimension_numbers<[1], [0], [0], [1], [0, 0, 1, 1], [], []>} : vector<8x128xf32>, vector<128x128xf32>, vector<8x128xf32> -> vector<8x128xf32>
      %88 = arith.addf %86, %87 : vector<8x128xf32>
      %89 = math.tanh %88 : vector<8x128xf32>
      %c5_i32 = arith.constant 5 : i32
      %90 = arith.index_cast %c5_i32 : i32 to index
      %c0_52 = arith.constant 0 : index
      %c0_53 = arith.constant 0 : index
      %91 = vector.load %arg9[%90, %c0_52, %c0_53] : memref<8x8x128xf32, #tpu.memory_space<vmem>>, vector<1x8x128xf32>
      %92 = vector.shape_cast %91 : vector<1x8x128xf32> to vector<8x128xf32>
      %cst_54 = arith.constant dense<0.000000e+00> : vector<8x128xf32>
      %93 = tpu.matmul %89, %58, %cst_54 {dimension_numbers = #tpu.dot_dimension_numbers<[1], [0], [0], [1], [0, 0, 1, 1], [], []>} : vector<8x128xf32>, vector<128x128xf32>, vector<8x128xf32> -> vector<8x128xf32>
      %94 = arith.addf %92, %93 : vector<8x128xf32>
      %95 = math.tanh %94 : vector<8x128xf32>
      %c6_i32 = arith.constant 6 : i32
      %96 = arith.index_cast %c6_i32 : i32 to index
      %c0_55 = arith.constant 0 : index
      %c0_56 = arith.constant 0 : index
      %97 = vector.load %arg9[%96, %c0_55, %c0_56] : memref<8x8x128xf32, #tpu.memory_space<vmem>>, vector<1x8x128xf32>
      %98 = vector.shape_cast %97 : vector<1x8x128xf32> to vector<8x128xf32>
      %cst_57 = arith.constant dense<0.000000e+00> : vector<8x128xf32>
      %99 = tpu.matmul %95, %58, %cst_57 {dimension_numbers = #tpu.dot_dimension_numbers<[1], [0], [0], [1], [0, 0, 1, 1], [], []>} : vector<8x128xf32>, vector<128x128xf32>, vector<8x128xf32> -> vector<8x128xf32>
      %100 = arith.addf %98, %99 : vector<8x128xf32>
      %101 = math.tanh %100 : vector<8x128xf32>
      %c7_i32 = arith.constant 7 : i32
      %102 = arith.index_cast %c7_i32 : i32 to index
      %c0_58 = arith.constant 0 : index
      %c0_59 = arith.constant 0 : index
      %103 = vector.load %arg9[%102, %c0_58, %c0_59] : memref<8x8x128xf32, #tpu.memory_space<vmem>>, vector<1x8x128xf32>
      %104 = vector.shape_cast %103 : vector<1x8x128xf32> to vector<8x128xf32>
      %cst_60 = arith.constant dense<0.000000e+00> : vector<8x128xf32>
      %105 = tpu.matmul %101, %58, %cst_60 {dimension_numbers = #tpu.dot_dimension_numbers<[1], [0], [0], [1], [0, 0, 1, 1], [], []>} : vector<8x128xf32>, vector<128x128xf32>, vector<8x128xf32> -> vector<8x128xf32>
      %106 = arith.addf %104, %105 : vector<8x128xf32>
      %107 = math.tanh %106 : vector<8x128xf32>
      %c8_i32 = arith.constant 8 : i32
      %c0_61 = arith.constant 0 : index
      %c0_62 = arith.constant 0 : index
      %108 = vector.load %arg10[%c0_61, %c0_62] : memref<8x128xf32, #tpu.memory_space<vmem>>, vector<8x128xf32>
      tpu.vector_store %arg10[%c0_61, %c0_62], %107 {strides = array<i32>} : memref<8x128xf32, #tpu.memory_space<vmem>>, vector<8x128xf32>,
    } else {
    }
    %c0 = arith.constant 0 : index
    %c0_1 = arith.constant 0 : index
    %3 = vector.load %arg10[%c0, %c0_1] : memref<8x128xf32, #tpu.memory_space<vmem>>, vector<8x128xf32>
    %c0_2 = arith.constant 0 : index
    %c0_3 = arith.constant 0 : index
    %4 = vector.load %arg6[%c0_2, %c0_3] : memref<128x128xf32, #tpu.memory_space<vmem>>, vector<128x128xf32>
    %cst = arith.constant dense<0.000000e+00> : vector<8x128xf32>
    %5 = tpu.matmul %3, %4, %cst {dimension_numbers = #tpu.dot_dimension_numbers<[1], [0], [0], [1], [0, 0, 1, 1], [], []>} : vector<8x128xf32>, vector<128x128xf32>, vector<8x128xf32> -> vector<8x128xf32>
    %c0_4 = arith.constant 0 : index
    %c0_5 = arith.constant 0 : index
    %6 = vector.load %arg7[%c0_4, %c0_5] : memref<1x128xf32, #tpu.memory_space<vmem>>, vector<1x128xf32>
    %7 = vector.broadcast %6 : vector<1x128xf32> to vector<8x128xf32>
    %8 = arith.addf %5, %7 : vector<8x128xf32>
    %c0_6 = arith.constant 0 : index
    %c0_7 = arith.constant 0 : index
    %9 = vector.load %arg8[%c0_6, %c0_7] : memref<8x128xf32, #tpu.memory_space<vmem>>, vector<8x128xf32>
    tpu.vector_store %arg8[%c0_6, %c0_7], %8 {strides = array<i32>} : memref<8x128xf32, #tpu.memory_space<vmem>>, vector<8x128xf32>,
    return
  }
  func.func @transform_0(%arg0: i32, %arg1: i32) -> (i32, i32, i32) {
    %c0_i32 = arith.constant 0 : i32
    %c0_i32_0 = arith.constant 0 : i32
    %c0_i32_1 = arith.constant 0 : i32
    return %arg0, %c0_i32, %c0_i32_0 : i32, i32, i32
  }
  func.func @transform_1(%arg0: i32, %arg1: i32) -> (i32, i32) {
    %c0_i32 = arith.constant 0 : i32
    %c0_i32_0 = arith.constant 0 : i32
    %c0_i32_1 = arith.constant 0 : i32
    return %c0_i32, %c0_i32_0 : i32, i32
  }
  func.func @transform_2(%arg0: i32, %arg1: i32) -> (i32, i32) {
    %c0_i32 = arith.constant 0 : i32
    %c0_i32_0 = arith.constant 0 : i32
    %c0_i32_1 = arith.constant 0 : i32
    return %c0_i32, %c0_i32_0 : i32, i32
  }
  func.func @transform_3(%arg0: i32, %arg1: i32) -> (i32, i32) {
    %c0_i32 = arith.constant 0 : i32
    %c0_i32_0 = arith.constant 0 : i32
    %c0_i32_1 = arith.constant 0 : i32
    return %c0_i32, %c0_i32_0 : i32, i32
  }
  func.func @transform_4(%arg0: i32, %arg1: i32) -> (i32, i32) {
    %c0_i32 = arith.constant 0 : i32
    %c0_i32_0 = arith.constant 0 : i32
    return %c0_i32, %arg1 : i32, i32
  }
  func.func @transform_5(%arg0: i32, %arg1: i32) -> (i32, i32) {
    %c0_i32 = arith.constant 0 : i32
    %c0_i32_0 = arith.constant 0 : i32
    return %c0_i32, %arg1 : i32, i32
  }
  func.func @transform_6(%arg0: i32, %arg1: i32) -> (i32, i32) {
    %c0_i32 = arith.constant 0 : i32
    return %arg0, %arg1 : i32, i32
  }
}

module attributes {stable_mosaic.version = 11 : i64} {
  func.func @rnn_head_kernel(%arg0: i32, %arg1: i32, %arg2: memref<8x8x64xf32, #tpu.memory_space<vmem>>, %arg3: memref<64x128xf32, #tpu.memory_space<vmem>>, %arg4: memref<128x128xf32, #tpu.memory_space<vmem>>, %arg5: memref<1x128xf32, #tpu.memory_space<vmem>>, %arg6: memref<128x128xf32, #tpu.memory_space<vmem>>, %arg7: memref<1x128xf32, #tpu.memory_space<vmem>>, %arg8: memref<8x128xf32, #tpu.memory_space<vmem>>, %arg9: memref<8x8x128xf32, #tpu.memory_space<vmem>>, %arg10: memref<8x128xf32, #tpu.memory_space<vmem>>) attributes {dimension_semantics = [#tpu.dimension_semantics<parallel>, #tpu.dimension_semantics<arbitrary>], iteration_bounds = array<i64: 1, 2>, scalar_prefetch = 0 : i64, scratch_operands = 2 : i64, tpu.core_type = #tpu.core_type<tc>, window_params = [{transform_indices = @transform_0, window_bounds = array<i64: 8, 8, 64>}, {pipeline_mode = #tpu.pipeline_mode<synchronous>, transform_indices = @transform_1, window_bounds = array<i64: 64, 128>}, {pipeline_mode = #tpu.pipeline_mode<synchronous>, transform_indices = @transform_2, window_bounds = array<i64: 128, 128>}, {pipeline_mode = #tpu.pipeline_mode<synchronous>, transform_indices = @transform_3, window_bounds = array<i64: 1, 128>}, {transform_indices = @transform_4, window_bounds = array<i64: 128, 128>}, {transform_indices = @transform_5, window_bounds = array<i64: 1, 128>}, {transform_indices = @transform_6, window_bounds = array<i64: 8, 128>}]} {
    %c0_i32 = arith.constant 0 : i32
    %0 = arith.cmpi eq, %arg1, %c0_i32 : i32
    %1 = arith.extui %0 : i1 to i32
    %c0_i32_0 = arith.constant 0 : i32
    %2 = arith.cmpi ne, %1, %c0_i32_0 : i32
    scf.if %2 {
      %c0_8 = arith.constant 0 : index
      %c0_9 = arith.constant 0 : index
      %10 = vector.load %arg3[%c0_8, %c0_9] : memref<64x128xf32, #tpu.memory_space<vmem>>, vector<64x128xf32>
      %c0_10 = arith.constant 0 : index
      %c0_11 = arith.constant 0 : index
      %11 = vector.load %arg5[%c0_10, %c0_11] : memref<1x128xf32, #tpu.memory_space<vmem>>, vector<1x128xf32>
      %c0_12 = arith.constant 0 : index
      %c0_13 = arith.constant 0 : index
      %c0_14 = arith.constant 0 : index
      %12 = vector.load %arg2[%c0_12, %c0_13, %c0_14] : memref<8x8x64xf32, #tpu.memory_space<vmem>>, vector<8x8x64xf32>
      %13 = vector.shape_cast %12 : vector<8x8x64xf32> to vector<64x64xf32>
      %cst_15 = arith.constant dense<0.000000e+00> : vector<64x128xf32>
      %14 = tpu.matmul %13, %10, %cst_15 {dimension_numbers = #tpu.dot_dimension_numbers<[1], [0], [0], [1], [0, 0, 1, 1], [], []>} : vector<64x64xf32>, vector<64x128xf32>, vector<64x128xf32> -> vector<64x128xf32>
      %15 = vector.broadcast %11 : vector<1x128xf32> to vector<64x128xf32>
      %16 = arith.addf %14, %15 : vector<64x128xf32>
      %17 = vector.shape_cast %16 : vector<64x128xf32> to vector<8x8x128xf32>
      %18 = vector.extract_strided_slice %17 {offsets = [0, 0, 0], sizes = [8, 1, 128], strides = [1, 1, 1]} : vector<8x8x128xf32> to vector<8x1x128xf32>
      %19 = vector.shape_cast %18 : vector<8x1x128xf32> to vector<8x128xf32>
      %c0_16 = arith.constant 0 : index
      %c0_17 = arith.constant 0 : index
      %c0_18 = arith.constant 0 : index
      %20 = vector.load %arg9[%c0_16, %c0_17, %c0_18] : memref<8x8x128xf32, #tpu.memory_space<vmem>>, vector<1x8x128xf32>
      %21 = vector.shape_cast %20 : vector<1x8x128xf32> to vector<8x128xf32>
      %22 = vector.shape_cast %19 : vector<8x128xf32> to vector<1x8x128xf32>
      tpu.vector_store %arg9[%c0_16, %c0_17, %c0_18], %22 {strides = array<i32>} : memref<8x8x128xf32, #tpu.memory_space<vmem>>, vector<1x8x128xf32>,
      %23 = vector.extract_strided_slice %17 {offsets = [0, 1, 0], sizes = [8, 1, 128], strides = [1, 1, 1]} : vector<8x8x128xf32> to vector<8x1x128xf32>
      %24 = vector.shape_cast %23 : vector<8x1x128xf32> to vector<8x128xf32>
      %c1 = arith.constant 1 : index
      %c0_19 = arith.constant 0 : index
      %c0_20 = arith.constant 0 : index
      %25 = vector.load %arg9[%c1, %c0_19, %c0_20] : memref<8x8x128xf32, #tpu.memory_space<vmem>>, vector<1x8x128xf32>
      %26 = vector.shape_cast %25 : vector<1x8x128xf32> to vector<8x128xf32>
      %27 = vector.shape_cast %24 : vector<8x128xf32> to vector<1x8x128xf32>
      tpu.vector_store %arg9[%c1, %c0_19, %c0_20], %27 {strides = array<i32>} : memref<8x8x128xf32, #tpu.memory_space<vmem>>, vector<1x8x128xf32>,
      %28 = vector.extract_strided_slice %17 {offsets = [0, 2, 0], sizes = [8, 1, 128], strides = [1, 1, 1]} : vector<8x8x128xf32> to vector<8x1x128xf32>
      %29 = vector.shape_cast %28 : vector<8x1x128xf32> to vector<8x128xf32>
      %c2 = arith.constant 2 : index
      %c0_21 = arith.constant 0 : index
      %c0_22 = arith.constant 0 : index
      %30 = vector.load %arg9[%c2, %c0_21, %c0_22] : memref<8x8x128xf32, #tpu.memory_space<vmem>>, vector<1x8x128xf32>
      %31 = vector.shape_cast %30 : vector<1x8x128xf32> to vector<8x128xf32>
      %32 = vector.shape_cast %29 : vector<8x128xf32> to vector<1x8x128xf32>
      tpu.vector_store %arg9[%c2, %c0_21, %c0_22], %32 {strides = array<i32>} : memref<8x8x128xf32, #tpu.memory_space<vmem>>, vector<1x8x128xf32>,
      %33 = vector.extract_strided_slice %17 {offsets = [0, 3, 0], sizes = [8, 1, 128], strides = [1, 1, 1]} : vector<8x8x128xf32> to vector<8x1x128xf32>
      %34 = vector.shape_cast %33 : vector<8x1x128xf32> to vector<8x128xf32>
      %c3 = arith.constant 3 : index
      %c0_23 = arith.constant 0 : index
      %c0_24 = arith.constant 0 : index
      %35 = vector.load %arg9[%c3, %c0_23, %c0_24] : memref<8x8x128xf32, #tpu.memory_space<vmem>>, vector<1x8x128xf32>
      %36 = vector.shape_cast %35 : vector<1x8x128xf32> to vector<8x128xf32>
      %37 = vector.shape_cast %34 : vector<8x128xf32> to vector<1x8x128xf32>
      tpu.vector_store %arg9[%c3, %c0_23, %c0_24], %37 {strides = array<i32>} : memref<8x8x128xf32, #tpu.memory_space<vmem>>, vector<1x8x128xf32>,
      %38 = vector.extract_strided_slice %17 {offsets = [0, 4, 0], sizes = [8, 1, 128], strides = [1, 1, 1]} : vector<8x8x128xf32> to vector<8x1x128xf32>
      %39 = vector.shape_cast %38 : vector<8x1x128xf32> to vector<8x128xf32>
      %c4 = arith.constant 4 : index
      %c0_25 = arith.constant 0 : index
      %c0_26 = arith.constant 0 : index
      %40 = vector.load %arg9[%c4, %c0_25, %c0_26] : memref<8x8x128xf32, #tpu.memory_space<vmem>>, vector<1x8x128xf32>
      %41 = vector.shape_cast %40 : vector<1x8x128xf32> to vector<8x128xf32>
      %42 = vector.shape_cast %39 : vector<8x128xf32> to vector<1x8x128xf32>
      tpu.vector_store %arg9[%c4, %c0_25, %c0_26], %42 {strides = array<i32>} : memref<8x8x128xf32, #tpu.memory_space<vmem>>, vector<1x8x128xf32>,
      %43 = vector.extract_strided_slice %17 {offsets = [0, 5, 0], sizes = [8, 1, 128], strides = [1, 1, 1]} : vector<8x8x128xf32> to vector<8x1x128xf32>
      %44 = vector.shape_cast %43 : vector<8x1x128xf32> to vector<8x128xf32>
      %c5 = arith.constant 5 : index
      %c0_27 = arith.constant 0 : index
      %c0_28 = arith.constant 0 : index
      %45 = vector.load %arg9[%c5, %c0_27, %c0_28] : memref<8x8x128xf32, #tpu.memory_space<vmem>>, vector<1x8x128xf32>
      %46 = vector.shape_cast %45 : vector<1x8x128xf32> to vector<8x128xf32>
      %47 = vector.shape_cast %44 : vector<8x128xf32> to vector<1x8x128xf32>
      tpu.vector_store %arg9[%c5, %c0_27, %c0_28], %47 {strides = array<i32>} : memref<8x8x128xf32, #tpu.memory_space<vmem>>, vector<1x8x128xf32>,
      %48 = vector.extract_strided_slice %17 {offsets = [0, 6, 0], sizes = [8, 1, 128], strides = [1, 1, 1]} : vector<8x8x128xf32> to vector<8x1x128xf32>
      %49 = vector.shape_cast %48 : vector<8x1x128xf32> to vector<8x128xf32>
      %c6 = arith.constant 6 : index
      %c0_29 = arith.constant 0 : index
      %c0_30 = arith.constant 0 : index
      %50 = vector.load %arg9[%c6, %c0_29, %c0_30] : memref<8x8x128xf32, #tpu.memory_space<vmem>>, vector<1x8x128xf32>
      %51 = vector.shape_cast %50 : vector<1x8x128xf32> to vector<8x128xf32>
      %52 = vector.shape_cast %49 : vector<8x128xf32> to vector<1x8x128xf32>
      tpu.vector_store %arg9[%c6, %c0_29, %c0_30], %52 {strides = array<i32>} : memref<8x8x128xf32, #tpu.memory_space<vmem>>, vector<1x8x128xf32>,
      %53 = vector.extract_strided_slice %17 {offsets = [0, 7, 0], sizes = [8, 1, 128], strides = [1, 1, 1]} : vector<8x8x128xf32> to vector<8x1x128xf32>
      %54 = vector.shape_cast %53 : vector<8x1x128xf32> to vector<8x128xf32>
      %c7 = arith.constant 7 : index
      %c0_31 = arith.constant 0 : index
      %c0_32 = arith.constant 0 : index
      %55 = vector.load %arg9[%c7, %c0_31, %c0_32] : memref<8x8x128xf32, #tpu.memory_space<vmem>>, vector<1x8x128xf32>
      %56 = vector.shape_cast %55 : vector<1x8x128xf32> to vector<8x128xf32>
      %57 = vector.shape_cast %54 : vector<8x128xf32> to vector<1x8x128xf32>
      tpu.vector_store %arg9[%c7, %c0_31, %c0_32], %57 {strides = array<i32>} : memref<8x8x128xf32, #tpu.memory_space<vmem>>, vector<1x8x128xf32>,
      %c0_33 = arith.constant 0 : index
      %c0_34 = arith.constant 0 : index
      %58 = vector.load %arg4[%c0_33, %c0_34] : memref<128x128xf32, #tpu.memory_space<vmem>>, vector<128x128xf32>
      %cst_35 = arith.constant 0.000000e+00 : f32
      %59 = vector.broadcast %cst_35 : f32 to vector<8x128xf32>
      %c0_i32_36 = arith.constant 0 : i32
      %60 = arith.index_cast %c0_i32_36 : i32 to index
      %c0_37 = arith.constant 0 : index
      %c0_38 = arith.constant 0 : index
      %61 = vector.load %arg9[%60, %c0_37, %c0_38] : memref<8x8x128xf32, #tpu.memory_space<vmem>>, vector<1x8x128xf32>
      %62 = vector.shape_cast %61 : vector<1x8x128xf32> to vector<8x128xf32>
      %cst_39 = arith.constant dense<0.000000e+00> : vector<8x128xf32>
      %63 = tpu.matmul %59, %58, %cst_39 {dimension_numbers = #tpu.dot_dimension_numbers<[1], [0], [0], [1], [0, 0, 1, 1], [], []>} : vector<8x128xf32>, vector<128x128xf32>, vector<8x128xf32> -> vector<8x128xf32>
      %64 = arith.addf %62, %63 : vector<8x128xf32>
      %65 = math.tanh %64 : vector<8x128xf32>
      %c1_i32 = arith.constant 1 : i32
      %66 = arith.index_cast %c1_i32 : i32 to index
      %c0_40 = arith.constant 0 : index
      %c0_41 = arith.constant 0 : index
      %67 = vector.load %arg9[%66, %c0_40, %c0_41] : memref<8x8x128xf32, #tpu.memory_space<vmem>>, vector<1x8x128xf32>
      %68 = vector.shape_cast %67 : vector<1x8x128xf32> to vector<8x128xf32>
      %cst_42 = arith.constant dense<0.000000e+00> : vector<8x128xf32>
      %69 = tpu.matmul %65, %58, %cst_42 {dimension_numbers = #tpu.dot_dimension_numbers<[1], [0], [0], [1], [0, 0, 1, 1], [], []>} : vector<8x128xf32>, vector<128x128xf32>, vector<8x128xf32> -> vector<8x128xf32>
      %70 = arith.addf %68, %69 : vector<8x128xf32>
      %71 = math.tanh %70 : vector<8x128xf32>
      %c2_i32 = arith.constant 2 : i32
      %72 = arith.index_cast %c2_i32 : i32 to index
      %c0_43 = arith.constant 0 : index
      %c0_44 = arith.constant 0 : index
      %73 = vector.load %arg9[%72, %c0_43, %c0_44] : memref<8x8x128xf32, #tpu.memory_space<vmem>>, vector<1x8x128xf32>
      %74 = vector.shape_cast %73 : vector<1x8x128xf32> to vector<8x128xf32>
      %cst_45 = arith.constant dense<0.000000e+00> : vector<8x128xf32>
      %75 = tpu.matmul %71, %58, %cst_45 {dimension_numbers = #tpu.dot_dimension_numbers<[1], [0], [0], [1], [0, 0, 1, 1], [], []>} : vector<8x128xf32>, vector<128x128xf32>, vector<8x128xf32> -> vector<8x128xf32>
      %76 = arith.addf %74, %75 : vector<8x128xf32>
      %77 = math.tanh %76 : vector<8x128xf32>
      %c3_i32 = arith.constant 3 : i32
      %78 = arith.index_cast %c3_i32 : i32 to index
      %c0_46 = arith.constant 0 : index
      %c0_47 = arith.constant 0 : index
      %79 = vector.load %arg9[%78, %c0_46, %c0_47] : memref<8x8x128xf32, #tpu.memory_space<vmem>>, vector<1x8x128xf32>
      %80 = vector.shape_cast %79 : vector<1x8x128xf32> to vector<8x128xf32>
      %cst_48 = arith.constant dense<0.000000e+00> : vector<8x128xf32>
      %81 = tpu.matmul %77, %58, %cst_48 {dimension_numbers = #tpu.dot_dimension_numbers<[1], [0], [0], [1], [0, 0, 1, 1], [], []>} : vector<8x128xf32>, vector<128x128xf32>, vector<8x128xf32> -> vector<8x128xf32>
      %82 = arith.addf %80, %81 : vector<8x128xf32>
      %83 = math.tanh %82 : vector<8x128xf32>
      %c4_i32 = arith.constant 4 : i32
      %84 = arith.index_cast %c4_i32 : i32 to index
      %c0_49 = arith.constant 0 : index
      %c0_50 = arith.constant 0 : index
      %85 = vector.load %arg9[%84, %c0_49, %c0_50] : memref<8x8x128xf32, #tpu.memory_space<vmem>>, vector<1x8x128xf32>
      %86 = vector.shape_cast %85 : vector<1x8x128xf32> to vector<8x128xf32>
      %cst_51 = arith.constant dense<0.000000e+00> : vector<8x128xf32>
      %87 = tpu.matmul %83, %58, %cst_51 {dimension_numbers = #tpu.dot_dimension_numbers<[1], [0], [0], [1], [0, 0, 1, 1], [], []>} : vector<8x128xf32>, vector<128x128xf32>, vector<8x128xf32> -> vector<8x128xf32>
      %88 = arith.addf %86, %87 : vector<8x128xf32>
      %89 = math.tanh %88 : vector<8x128xf32>
      %c5_i32 = arith.constant 5 : i32
      %90 = arith.index_cast %c5_i32 : i32 to index
      %c0_52 = arith.constant 0 : index
      %c0_53 = arith.constant 0 : index
      %91 = vector.load %arg9[%90, %c0_52, %c0_53] : memref<8x8x128xf32, #tpu.memory_space<vmem>>, vector<1x8x128xf32>
      %92 = vector.shape_cast %91 : vector<1x8x128xf32> to vector<8x128xf32>
      %cst_54 = arith.constant dense<0.000000e+00> : vector<8x128xf32>
      %93 = tpu.matmul %89, %58, %cst_54 {dimension_numbers = #tpu.dot_dimension_numbers<[1], [0], [0], [1], [0, 0, 1, 1], [], []>} : vector<8x128xf32>, vector<128x128xf32>, vector<8x128xf32> -> vector<8x128xf32>
      %94 = arith.addf %92, %93 : vector<8x128xf32>
      %95 = math.tanh %94 : vector<8x128xf32>
      %c6_i32 = arith.constant 6 : i32
      %96 = arith.index_cast %c6_i32 : i32 to index
      %c0_55 = arith.constant 0 : index
      %c0_56 = arith.constant 0 : index
      %97 = vector.load %arg9[%96, %c0_55, %c0_56] : memref<8x8x128xf32, #tpu.memory_space<vmem>>, vector<1x8x128xf32>
      %98 = vector.shape_cast %97 : vector<1x8x128xf32> to vector<8x128xf32>
      %cst_57 = arith.constant dense<0.000000e+00> : vector<8x128xf32>
      %99 = tpu.matmul %95, %58, %cst_57 {dimension_numbers = #tpu.dot_dimension_numbers<[1], [0], [0], [1], [0, 0, 1, 1], [], []>} : vector<8x128xf32>, vector<128x128xf32>, vector<8x128xf32> -> vector<8x128xf32>
      %100 = arith.addf %98, %99 : vector<8x128xf32>
      %101 = math.tanh %100 : vector<8x128xf32>
      %c7_i32 = arith.constant 7 : i32
      %102 = arith.index_cast %c7_i32 : i32 to index
      %c0_58 = arith.constant 0 : index
      %c0_59 = arith.constant 0 : index
      %103 = vector.load %arg9[%102, %c0_58, %c0_59] : memref<8x8x128xf32, #tpu.memory_space<vmem>>, vector<1x8x128xf32>
      %104 = vector.shape_cast %103 : vector<1x8x128xf32> to vector<8x128xf32>
      %cst_60 = arith.constant dense<0.000000e+00> : vector<8x128xf32>
      %105 = tpu.matmul %101, %58, %cst_60 {dimension_numbers = #tpu.dot_dimension_numbers<[1], [0], [0], [1], [0, 0, 1, 1], [], []>} : vector<8x128xf32>, vector<128x128xf32>, vector<8x128xf32> -> vector<8x128xf32>
      %106 = arith.addf %104, %105 : vector<8x128xf32>
      %107 = math.tanh %106 : vector<8x128xf32>
      %c8_i32 = arith.constant 8 : i32
      %c0_61 = arith.constant 0 : index
      %c0_62 = arith.constant 0 : index
      %108 = vector.load %arg10[%c0_61, %c0_62] : memref<8x128xf32, #tpu.memory_space<vmem>>, vector<8x128xf32>
      tpu.vector_store %arg10[%c0_61, %c0_62], %107 {strides = array<i32>} : memref<8x128xf32, #tpu.memory_space<vmem>>, vector<8x128xf32>,
    } else {
    }
    %c0 = arith.constant 0 : index
    %c0_1 = arith.constant 0 : index
    %3 = vector.load %arg10[%c0, %c0_1] : memref<8x128xf32, #tpu.memory_space<vmem>>, vector<8x128xf32>
    %c0_2 = arith.constant 0 : index
    %c0_3 = arith.constant 0 : index
    %4 = vector.load %arg6[%c0_2, %c0_3] : memref<128x128xf32, #tpu.memory_space<vmem>>, vector<128x128xf32>
    %cst = arith.constant dense<0.000000e+00> : vector<8x128xf32>
    %5 = tpu.matmul %3, %4, %cst {dimension_numbers = #tpu.dot_dimension_numbers<[1], [0], [0], [1], [0, 0, 1, 1], [], []>} : vector<8x128xf32>, vector<128x128xf32>, vector<8x128xf32> -> vector<8x128xf32>
    %c0_4 = arith.constant 0 : index
    %c0_5 = arith.constant 0 : index
    %6 = vector.load %arg7[%c0_4, %c0_5] : memref<1x128xf32, #tpu.memory_space<vmem>>, vector<1x128xf32>
    %7 = vector.broadcast %6 : vector<1x128xf32> to vector<8x128xf32>
    %8 = arith.addf %5, %7 : vector<8x128xf32>
    %c0_6 = arith.constant 0 : index
    %c0_7 = arith.constant 0 : index
    %9 = vector.load %arg8[%c0_6, %c0_7] : memref<8x128xf32, #tpu.memory_space<vmem>>, vector<8x128xf32>
    tpu.vector_store %arg8[%c0_6, %c0_7], %8 {strides = array<i32>} : memref<8x128xf32, #tpu.memory_space<vmem>>, vector<8x128xf32>,
    return
  }
  func.func @transform_0(%arg0: i32, %arg1: i32) -> (i32, i32, i32) {
    %c0_i32 = arith.constant 0 : i32
    %c0_i32_0 = arith.constant 0 : i32
    %c0_i32_1 = arith.constant 0 : i32
    return %arg0, %c0_i32, %c0_i32_0 : i32, i32, i32
  }
  func.func @transform_1(%arg0: i32, %arg1: i32) -> (i32, i32) {
    %c0_i32 = arith.constant 0 : i32
    %c0_i32_0 = arith.constant 0 : i32
    %c0_i32_1 = arith.constant 0 : i32
    return %c0_i32, %c0_i32_0 : i32, i32
  }
  func.func @transform_2(%arg0: i32, %arg1: i32) -> (i32, i32) {
    %c0_i32 = arith.constant 0 : i32
    %c0_i32_0 = arith.constant 0 : i32
    %c0_i32_1 = arith.constant 0 : i32
    return %c0_i32, %c0_i32_0 : i32, i32
  }
  func.func @transform_3(%arg0: i32, %arg1: i32) -> (i32, i32) {
    %c0_i32 = arith.constant 0 : i32
    %c0_i32_0 = arith.constant 0 : i32
    %c0_i32_1 = arith.constant 0 : i32
    return %c0_i32, %c0_i32_0 : i32, i32
  }
  func.func @transform_4(%arg0: i32, %arg1: i32) -> (i32, i32) {
    %c0_i32 = arith.constant 0 : i32
    %c0_i32_0 = arith.constant 0 : i32
    return %c0_i32, %arg1 : i32, i32
  }
  func.func @transform_5(%arg0: i32, %arg1: i32) -> (i32, i32) {
    %c0_i32 = arith.constant 0 : i32
    %c0_i32_0 = arith.constant 0 : i32
    return %c0_i32, %arg1 : i32, i32
  }
  func.func @transform_6(%arg0: i32, %arg1: i32) -> (i32, i32) {
    %c0_i32 = arith.constant 0 : i32
    return %arg0, %arg1 : i32, i32
  }
}

</mosaic_0001>

<bundles_post_ra>
// kernel: tpu_custom_call.1
= control target key start
LH: loop header
LB: loop body
LE: loop exit
PB: predicated region body
PF: predicated region fallthrough
CT: control target
= control target key end

     0   :  { %s1773_s0 = inlined_call_operand.hbm [shape: f32[8,8,64], index: 0, kind: input, shape index: {}]   ;;  %s1774_s1 = inlined_call_operand.hbm [shape: f32[64,128], index: 1, kind: input, shape index: {}]   ;;  %s1775_s2 = inlined_call_operand.hbm [shape: f32[128,128], index: 2, kind: input, shape index: {}]   ;;  %s1776_s3 = inlined_call_operand.vmem [shape: f32[1,128], index: 3, kind: input, shape index: {}]   ;;  %s1777_s4 = inlined_call_operand.hbm [shape: f32[128,256], index: 4, kind: input, shape index: {}]   ;;  %s1778_s5 = inlined_call_operand.vmem [shape: f32[1,256], index: 5, kind: input, shape index: {}]   ;;  %s1779_s6 = inlined_call_operand.hbm [shape: f32[8,256], index: 6, kind: output, shape index: {}]  }
   0x1   :  { %1783 = sst [smem:[#allocation18_spill]] %s1773_s0 }
   0x2   :  { %1784 = sst [smem:[#allocation19_spill]] %s1774_s1 }
   0x3   :  { %1785 = sst [smem:[#allocation20_spill]] %s1775_s2 }
   0x4   :  { %11 = vsyncpa [#allocation5], 0 }
   0x5   :  { %12 = vsyncpa [#allocation8], 0 }
   0x6   :  { %13 = vsyncpa [#allocation11], 0 }
   0x7   :  { %15 = vsyncpa [#allocation11 + $0x1], 0 }
   0x8   :  { %16 = vsyncpa [#allocation6], 0 }
   0x9   :  { %18 = vsyncpa [#allocation6 + $0x1], 0  ;;  %s1336_s21 = smov 0   ;;  %s1338_s22 = smov 0  }
   0xa   :  { %s1340_s23 = smov 0   ;;  %s1342_s24 = smov 0  }
   0xb   :  { %s1344_s25 = smov 0   ;;  %s1346_s26 = smov 0  }
   0xc LB: > { %s939_s27 = sadd.s32 4294967295, %s1292_s26   ;;  %s940_s28 = sadd.s32 4294967294, %s1292_s26   ;;  %s1292_s26 = sphi %s1346_s26, %s24_s26   ;;  %s1288_s25 = sphi %s1344_s25, %s1805_s25   ;;  %s1284_s24 = sphi %s1342_s24, %s1804_s24   ;;  %s1280_s23 = sphi %s1340_s23, %s1803_s23   ;;  %s1276_s22 = sphi %s1338_s22, %s1802_s22   ;;  %s1272_s21 = sphi %s1336_s21, %s1801_s21  }
   0xd   : > { %p145_p0 = scmp.ne.s32.totalorder %s1276_s22, %s1272_s21  ;;  %p1370_p1 = scmp.eq.s32.totalorder %s939_s27, 0 }
   0xe   : > { %p1374_p2 = scmp.eq.s32.totalorder %s939_s27, 1  ;;  %p203_p3 = scmp.eq.s32.totalorder %s940_s28, 1 }
   0xf   : > { %p1380_p4 = por %p1370_p1, %p145_p0  ;;  %p941_p5 = scmp.ge.s32.totalorder %s1292_s26, 1 }
  0x10   : > { %p1385_p6 = por %p203_p3, %p145_p0  ;;  %p210_p7 = scmp.lt.s32.totalorder %s1292_s26, 3 }
  0x11   : > { %s1791_s1 = sld [smem:[#allocation19_spill]]  ;;  %s1294_s13 = smov [#allocation7]  }
  0x12   : > { %p1390_p8 = pnand %p941_p5, %p210_p7  ;;  %s240_s14 = sshll.u32 %s1294_s13, 4  ;;  %s241_s14 = int_to_ptr.vmem [resolvable:$true] %s240_s14 }
  0x13   : > { %p945_p10 = scmp.ge.s32.totalorder %s1292_s26, 2  ;;  %s1793_s0 = sld [smem:[#allocation18_spill]] }
  0x14   : > { %p983_p9 = pneg %p1390_p8  ;;  %s1780_s19 = smov 128  }
  0x15   : > { %s1781_s20 = smov 8   ;;  %s1297_s27 = smov [#allocation4]  }
  0x16   : > { %p1402_p11 = pnand %p983_p9, %p1370_p1  ;;  %s226_s28 = sshll.u32 %s1297_s27, 4  ;;  %s227_s28 = int_to_ptr.vmem [resolvable:$true] %s226_s28 }
  0x17   : > { %s238_s12 = sshll.u32 %s1791_s1, 4  ;;  %s1794_s2 = sld [smem:[#allocation20_spill]]  ;;  %s239_s12 = int_to_ptr.hbm [resolvable:$true] %s238_s12 }
  0x18   : > { %989 = dma.hbm_to_vmem [thread:$0]  (!%p1402_p11), %s239_s12, 1024, %s241_s14, [#allocation8], %s1780_s19, %s1780_s19, %s1781_s20  }
  0x19   : > { %s224_s18 = sshll.u32 %s1793_s0, 4  ;;  %s1298_s12 = smov [#allocation9]   ;;  %s225_s18 = int_to_ptr.hbm [resolvable:$true] %s224_s18 }
  0x1a   : > { %986 = dma.hbm_to_vmem [thread:$0]  (!%p1402_p11), %s225_s18, 1024, %s227_s28, [#allocation5], %s1780_s19, %s1780_s19, %s1781_s20  }
  0x1b   : > { %s254_s14 = sshll.u32 %s1298_s12, 4  ;;  %s33_s16 = sadd.s32 1, %s1288_s25  ;;  %s255_s14 = int_to_ptr.vmem [resolvable:$true] %s254_s14 }
  0x1c   : > { %p34_p12 = scmp.ge.s32.totalorder %s33_s16, 2  ;;  %s132_s17 = sadd.s32 1, %s1280_s23 }
  0x1d   : > { %s252_s13 = sshll.u32 %s1794_s2, 4  ;;  %p139_p13 = scmp.ne.s32.totalorder %s1280_s23, %s1276_s22  ;;  %s253_s13 = int_to_ptr.hbm [resolvable:$true] %s252_s13 }
  0x1e   : > { %992 = dma.hbm_to_vmem [thread:$0]  (!%p1402_p11), %s253_s13, 2048, %s255_s14, [#allocation8], %s1780_s19, %s1780_s19, %s1781_s20  }
  0x1f   : > { %p140_p0 = scmp.eq.s32.totalorder %s1292_s26, 0  ;;  %s1807_s16 = smov (%p34_p12, %s33_s16), 0 }
  0x20   : > { %1795 = sst [smem:[#allocation17_spill]] %s1807_s16  ;;  %p1440_p5 = por %p1374_p2, %p139_p13 }
  0x21   : > { %p1434_p3 = por %p140_p0, %p139_p13  ;;  %s129_s27 = ssub.s32 %s1288_s25, %s1807_s16 }
  0x22   : > { %p1004_p7 = scmp.lt.s32.totalorder %s1292_s26, 2  ;;  %p130_p9 = scmp.eq.s32.totalorder %s129_s27, 0 }
  0x23   : > { %s271_s28 = sand.u32 1, %s1280_s23   ;;  %s947_s13 = sshll.u32 %s1288_s25, 3 }
  0x24   : > { %s946_s10 = sshll.u32 %s271_s28, 7  ;;  %s279_s19 = scalar_lea.hbm %s1777_s4, %s947_s13 }
  0x25   : > { %s1449_s11 = scalar_select %p130_p9, %s1280_s23, %s132_s17  }
  0x26   : > { %s275_s20 = scalar_lea.vmem [#allocation10], %s946_s10  ;;  %s280_s30 = sshll.u32 %s279_s19, 4  ;;  %s281_s30 = int_to_ptr.hbm [resolvable:$true] %s280_s30 }
  0x27   : > { %s282_s0 = sshll.u32 %s275_s20, 4  ;;  %p994_p2 = pnand %p1004_p7, %p1434_p3  ;;  %s283_s0 = int_to_ptr.vmem [resolvable:$true] %s282_s0 }
  0x28   : > { %s272_s1 = scalar_lea.sflag [#allocation11], %s271_s28  ;;  %s1299_s2 = smov 256  }
  0x29   : > { %s1798_s16 = smov 8   ;;  %s1799_s27 = smov 128  }
  0x2a   : > { %996 = dma.hbm_to_vmem [thread:$0]  (!%p994_p2), %s281_s30, 2048, %s283_s0, %s272_s1, %s1299_s2, %s1799_s27, %s1798_s16  }
  0x2b   : > { %300 = sbr.rel (%p1390_p8) target bundleno = 1408 (0x580), region = 44 }
  0x30   : > { %1255 = dma.done.wait (%p1370_p1), [#allocation5], 1024  }
  0x31   : > { %1257 = vsyncadd (%p1370_p1), [#allocation5], 4294966272 }
  0x32   : > { %1259 = dma.done.wait (%p1370_p1), [#allocation8], 3072  }
  0x33   : > { %1261 = vsyncadd (%p1370_p1), [#allocation8], 4294964224  ;;  %s1470_s19 = sand.u32 1, %s1276_s22  }
  0x34   : > { %s952_s0 = sshll.u32 %s1470_s19, 7  ;;  %s318_s1 = scalar_lea.sflag [#allocation11], %s1470_s19 }
  0x35   : > { %s1474_s2 = scalar_lea.vmem [#allocation10], %s952_s0 }
  0x36   : > { %1263 = dma.done.wait (%p1380_p4), %s318_s1, 2048  }
  0x37   : > { %1265 = vsyncadd (%p1380_p4), %s318_s1, 4294965248  ;;  %s953_s29 = sshll.u32 %s1470_s19, 3  ;;  %p355_p1 = scmp.lt.s32.totalorder %s1284_s24, 1 }
  0x38   : > { %s1489_s18 = scalar_lea.vmem [#allocation12], %s953_s29  ;;  %p954_p8 = scmp.ne.s32.totalorder %s1284_s24, 0 }
  0x39   : > { %s1483_s9 = scalar_select %p355_p1, %s1284_s24, 1 }
  0x3a   : > { %361 = sbr.rel (%p954_p8) target bundleno = 1245 (0x4dd), region = 64 }
  0x3b   : > { %s357_s17 = scalar_lea.vmem %s1778_s5, %s1483_s9 }
  0x3f   : > { %v369_v0 = vld [vmem:[#allocation7 + $0x38] sm:$0xff]  ;;  %v368_v1 = vld [vmem:[#allocation7 + $0x30] sm:$0xff]  ;;  %v367_v2 = vld [vmem:[#allocation7 + $0x28] sm:$0xff]  ;;  %vm382_vm0 = vcmask 523264   ;;  %v1300_v29 = vmov 0.0   ;;  %vm475_vm1 = vcmask 1047559  }
  0x40   : > { %415 = vmatpush.msra.mxu0 %v369_v0  ;;  %v366_v3 = vld [vmem:[#allocation7 + $0x20] sm:$0xff]  ;;  %v365_v4 = vld [vmem:[#allocation7 + $0x18] sm:$0xff]  ;;  %v364_v5 = vld [vmem:[#allocation7 + $0x10] sm:$0xff]  ;;  %vm472_vm2 = vcmask 1046534   ;;  %vm469_vm3 = vcmask 1045509   ;;  %vm466_vm4 = vcmask 1044484  }
  0x41   : > { %v363_v6 = vld [vmem:[#allocation7 + $0x8] sm:$0xff]  ;;  %v362_v7 = vld [vmem:[#allocation7] sm:$0xff]  ;;  %v1492_v9 = vld [vmem:[#allocation9 + $0x78] sm:$0xff]  ;;  %vm463_vm5 = vcmask 1043459   ;;  %vm460_vm6 = vcmask 1042434   ;;  %vm457_vm7 = vcmask 1041409  }
  0x42   : > { %416 = vmatpush.msra.mxu0 %v368_v1  ;;  %v371_v8 = vld [vmem:[#allocation4] sm:$0xff]  ;;  %573 = vmatpush.msra.mxu1 %v1492_v9  ;;  %v1496_v10 = vld [vmem:[#allocation9 + $0x70] sm:$0xff]  ;;  %v1501_v11 = vld [vmem:[#allocation9 + $0x68] sm:$0xff] }
  0x43   : > { %596 = vmatpush.msra.mxu2 %v1492_v9  ;;  %619 = vmatpush.msra.mxu3 %v1492_v9  ;;  %v1507_v12 = vld [vmem:[#allocation9 + $0x60] sm:$0xff]  ;;  %v372_v13 = vld [vmem:[#allocation4 + $0x8] sm:$0xff]  ;;  %v1513_v14 = vld [vmem:[#allocation9 + $0x58] sm:$0xff] }
  0x44   : > { %417 = vmatpush.msra.mxu0 %v367_v2  ;;  %574 = vmatpush.msra.mxu1 %v1496_v10  ;;  %v1519_v15 = vld [vmem:[#allocation9 + $0x50] sm:$0xff]  ;;  %v1525_v16 = vld [vmem:[#allocation9 + $0x48] sm:$0xff]  ;;  %v1531_v17 = vld [vmem:[#allocation9 + $0x40] sm:$0xff] }
  0x45   : > { %597 = vmatpush.msra.mxu2 %v1496_v10  ;;  %620 = vmatpush.msra.mxu3 %v1496_v10  ;;  %v373_v18 = vld [vmem:[#allocation4 + $0x10] sm:$0xff]  ;;  %v1537_v19 = vld [vmem:[#allocation9 + $0x38] sm:$0xff]  ;;  %v1549_v21 = vld [vmem:[#allocation9 + $0x28] sm:$0xff] }
  0x46   : > { %418 = vmatpush.msra.mxu0 %v366_v3  ;;  %575 = vmatpush.msra.mxu1 %v1501_v11  ;;  %v1543_v20 = vld [vmem:[#allocation9 + $0x30] sm:$0xff]  ;;  %v1555_v22 = vld [vmem:[#allocation9 + $0x20] sm:$0xff]  ;;  %v374_v23 = vld [vmem:[#allocation4 + $0x18] sm:$0xff] }
  0x47   : > { %598 = vmatpush.msra.mxu2 %v1501_v11  ;;  %621 = vmatpush.msra.mxu3 %v1501_v11  ;;  %v1561_v24 = vld [vmem:[#allocation9 + $0x18] sm:$0xff]  ;;  %v1567_v25 = vld [vmem:[#allocation9 + $0x10] sm:$0xff]  ;;  %v1573_v26 = vld [vmem:[#allocation9 + $0x8] sm:$0xff] }
  0x48   : > { %419 = vmatpush.msra.mxu0 %v365_v4  ;;  %576 = vmatpush.msra.mxu1 %v1507_v12  ;;  %v1575_v27 = vld [vmem:[#allocation9] sm:$0xff]  ;;  %v376_v30 = vld [vmem:[#allocation4 + $0x28] sm:$0xff]  ;;  %v377_v31 = vld [vmem:[#allocation4 + $0x30] sm:$0xff] }
  0x49   : > { %599 = vmatpush.msra.mxu2 %v1507_v12  ;;  %622 = vmatpush.msra.mxu3 %v1507_v12  ;;  %v375_v28 = vld [vmem:[#allocation4 + $0x20] sm:$0xff]  ;;  %v378_v32 = vld [vmem:[#allocation4 + $0x38] sm:$0xff] }
  0x4a   : > { %420 = vmatpush.msra.mxu0 %v364_v5  ;;  %577 = vmatpush.msra.mxu1 %v1513_v14  ;;  %v1064_v33 = vld [vmem:[%s1776_s3] ss:$0 sm:$0xff] }
  0x4b   : > { %600 = vmatpush.msra.mxu2 %v1513_v14  ;;  %623 = vmatpush.msra.mxu3 %v1513_v14 }
  0x4c   : > { %421 = vmatpush.msra.mxu0 %v363_v6  ;;  %578 = vmatpush.msra.mxu1 %v1519_v15 }
  0x4d   : > { %601 = vmatpush.msra.mxu2 %v1519_v15  ;;  %624 = vmatpush.msra.mxu3 %v1519_v15 }
  0x4e   : > { %422 = vmatpush.msra.mxu0 %v362_v7  ;;  %579 = vmatpush.msra.mxu1 %v1525_v16 }
  0x4f   : > { %955 = vmatmul.msk.f32.vlgmr.msra.gmra.mxu0 %vm382_vm0, %v371_v8  ;;  %602 = vmatpush.msra.mxu2 %v1525_v16 }
  0x50   : > { %711 = vmatpush.msrb.mxu0 %v1492_v9  ;;  %625 = vmatpush.msra.mxu3 %v1525_v16 }
  0x51   : > { %580 = vmatpush.msra.mxu1 %v1531_v17  ;;  %603 = vmatpush.msra.mxu2 %v1531_v17 }
  0x52   : > { %712 = vmatpush.msrb.mxu0 %v1496_v10  ;;  %626 = vmatpush.msra.mxu3 %v1531_v17 }
  0x53   : > { %581 = vmatpush.msra.mxu1 %v1537_v19  ;;  %604 = vmatpush.msra.mxu2 %v1537_v19 }
  0x54   : > { %713 = vmatpush.msrb.mxu0 %v1501_v11  ;;  %627 = vmatpush.msra.mxu3 %v1537_v19 }
  0x55   : > { %582 = vmatpush.msra.mxu1 %v1543_v20  ;;  %605 = vmatpush.msra.mxu2 %v1543_v20 }
  0x56   : > { %714 = vmatpush.msrb.mxu0 %v1507_v12  ;;  %628 = vmatpush.msra.mxu3 %v1543_v20 }
  0x57   : > { %956 = vmatmul.msk.f32.gmra.mxu0 %vm382_vm0, %v372_v13  ;;  %583 = vmatpush.msra.mxu1 %v1549_v21 }
  0x58   : > { %715 = vmatpush.msrb.mxu0 %v1513_v14  ;;  %606 = vmatpush.msra.mxu2 %v1549_v21 }
  0x59   : > { %629 = vmatpush.msra.mxu3 %v1549_v21  ;;  %584 = vmatpush.msra.mxu1 %v1555_v22 }
  0x5a   : > { %716 = vmatpush.msrb.mxu0 %v1519_v15  ;;  %607 = vmatpush.msra.mxu2 %v1555_v22 }
  0x5b   : > { %630 = vmatpush.msra.mxu3 %v1555_v22  ;;  %585 = vmatpush.msra.mxu1 %v1561_v24 }
  0x5c   : > { %717 = vmatpush.msrb.mxu0 %v1525_v16  ;;  %608 = vmatpush.msra.mxu2 %v1561_v24 }
  0x5d   : > { %631 = vmatpush.msra.mxu3 %v1561_v24  ;;  %586 = vmatpush.msra.mxu1 %v1567_v25 }
  0x5e   : > { %718 = vmatpush.msrb.mxu0 %v1531_v17  ;;  %609 = vmatpush.msra.mxu2 %v1567_v25 }
  0x5f   : > { %957 = vmatmul.msk.f32.gmra.mxu0 %vm382_vm0, %v373_v18  ;;  %632 = vmatpush.msra.mxu3 %v1567_v25 }
  0x60   : > { %719 = vmatpush.msrb.mxu0 %v1537_v19  ;;  %587 = vmatpush.msra.mxu1 %v1573_v26 }
  0x61   : > { %610 = vmatpush.msra.mxu2 %v1573_v26  ;;  %633 = vmatpush.msra.mxu3 %v1573_v26 }
  0x62   : > { %720 = vmatpush.msrb.mxu0 %v1543_v20  ;;  %588 = vmatpush.msra.mxu1 %v1575_v27 }
  0x63   : > { %589 = vmatmul.f32.vlgmr.msra.gmra.mxu1 %v1300_v29  ;;  %611 = vmatpush.msra.mxu2 %v1575_v27 }
  0x64   : > { %721 = vmatpush.msrb.mxu0 %v1549_v21  ;;  %634 = vmatpush.msra.mxu3 %v1575_v27 }
  0x65   : > { %642 = vmatpush.msrb.mxu1 %v1492_v9  ;;  %665 = vmatpush.msrb.mxu2 %v1492_v9 }
  0x66   : > { %688 = vmatpush.msrb.mxu3 %v1492_v9  ;;  %722 = vmatpush.msrb.mxu0 %v1555_v22 }
  0x67   : > { %958 = vmatmul.msk.f32.gmra.mxu0 %vm382_vm0, %v374_v23  ;;  %643 = vmatpush.msrb.mxu1 %v1496_v10 }
  0x68   : > { %666 = vmatpush.msrb.mxu2 %v1496_v10  ;;  %689 = vmatpush.msrb.mxu3 %v1496_v10 }
  0x69   : > { %644 = vmatpush.msrb.mxu1 %v1501_v11  ;;  %723 = vmatpush.msrb.mxu0 %v1561_v24 }
  0x6a   : > { %667 = vmatpush.msrb.mxu2 %v1501_v11  ;;  %690 = vmatpush.msrb.mxu3 %v1501_v11 }
  0x6b   : > { %645 = vmatpush.msrb.mxu1 %v1507_v12  ;;  %724 = vmatpush.msrb.mxu0 %v1567_v25 }
  0x6c   : > { %668 = vmatpush.msrb.mxu2 %v1507_v12  ;;  %691 = vmatpush.msrb.mxu3 %v1507_v12 }
  0x6d   : > { %646 = vmatpush.msrb.mxu1 %v1513_v14  ;;  %725 = vmatpush.msrb.mxu0 %v1573_v26 }
  0x6e   : > { %669 = vmatpush.msrb.mxu2 %v1513_v14  ;;  %692 = vmatpush.msrb.mxu3 %v1513_v14 }
  0x6f   : > { %959 = vmatmul.msk.f32.gmra.mxu0 %vm382_vm0, %v375_v28  ;;  %647 = vmatpush.msrb.mxu1 %v1519_v15 }
  0x70   : > { %670 = vmatpush.msrb.mxu2 %v1519_v15  ;;  %693 = vmatpush.msrb.mxu3 %v1519_v15 }
  0x71   : > { %648 = vmatpush.msrb.mxu1 %v1525_v16  ;;  %726 = vmatpush.msrb.mxu0 %v1575_v27 }
  0x72   : > { %671 = vmatpush.msrb.mxu2 %v1525_v16  ;;  %694 = vmatpush.msrb.mxu3 %v1525_v16 }
  0x73   : > { %649 = vmatpush.msrb.mxu1 %v1531_v17 }
  0x74   : > { %672 = vmatpush.msrb.mxu2 %v1531_v17  ;;  %695 = vmatpush.msrb.mxu3 %v1531_v17 }
  0x75   : > { %650 = vmatpush.msrb.mxu1 %v1537_v19 }
  0x76   : > { %673 = vmatpush.msrb.mxu2 %v1537_v19  ;;  %696 = vmatpush.msrb.mxu3 %v1537_v19 }
  0x77   : > { %960 = vmatmul.msk.f32.gmra.mxu0 %vm382_vm0, %v376_v30  ;;  %651 = vmatpush.msrb.mxu1 %v1543_v20 }
  0x78   : > { %674 = vmatpush.msrb.mxu2 %v1543_v20  ;;  %697 = vmatpush.msrb.mxu3 %v1543_v20 }
  0x79   : > { %652 = vmatpush.msrb.mxu1 %v1549_v21 }
  0x7a   : > { %675 = vmatpush.msrb.mxu2 %v1549_v21  ;;  %698 = vmatpush.msrb.mxu3 %v1549_v21 }
  0x7b   : > { %653 = vmatpush.msrb.mxu1 %v1555_v22 }
  0x7c   : > { %676 = vmatpush.msrb.mxu2 %v1555_v22  ;;  %699 = vmatpush.msrb.mxu3 %v1555_v22 }
  0x7d   : > { %654 = vmatpush.msrb.mxu1 %v1561_v24 }
  0x7e   : > { %677 = vmatpush.msrb.mxu2 %v1561_v24  ;;  %700 = vmatpush.msrb.mxu3 %v1561_v24 }
  0x7f   : > { %961 = vmatmul.msk.f32.gmra.mxu0 %vm382_vm0, %v377_v31  ;;  %655 = vmatpush.msrb.mxu1 %v1567_v25 }
  0x80   : > { %678 = vmatpush.msrb.mxu2 %v1567_v25  ;;  %701 = vmatpush.msrb.mxu3 %v1567_v25 }
  0x81   : > { %656 = vmatpush.msrb.mxu1 %v1573_v26 }
  0x82   : > { %679 = vmatpush.msrb.mxu2 %v1573_v26  ;;  %702 = vmatpush.msrb.mxu3 %v1573_v26 }
  0x83   : > { %657 = vmatpush.msrb.mxu1 %v1575_v27 }
  0x84   : > { %680 = vmatpush.msrb.mxu2 %v1575_v27  ;;  %703 = vmatpush.msrb.mxu3 %v1575_v27 }
  0x85   : > { %734 = vmatpush.msra.mxu1 %v1492_v9 }
  0x87   : > { %962 = vmatmul.msk.f32.gmra.mxu0 %vm382_vm0, %v378_v32  ;;  %735 = vmatpush.msra.mxu1 %v1496_v10 }
  0x89   : > { %736 = vmatpush.msra.mxu1 %v1501_v11 }
  0x8b   : > { %737 = vmatpush.msra.mxu1 %v1507_v12 }
  0x8d   : > { %738 = vmatpush.msra.mxu1 %v1513_v14 }
  0x8f   : > { %739 = vmatpush.msra.mxu1 %v1519_v15 }
  0x91   : > { %740 = vmatpush.msra.mxu1 %v1525_v16 }
  0x93   : > { %741 = vmatpush.msra.mxu1 %v1531_v17 }
  0x95   : > { %742 = vmatpush.msra.mxu1 %v1537_v19 }
  0x97   : > { %743 = vmatpush.msra.mxu1 %v1543_v20 }
  0x99   : > { %744 = vmatpush.msra.mxu1 %v1549_v21 }
  0x9b   : > { %745 = vmatpush.msra.mxu1 %v1555_v22 }
  0x9d   : > { %746 = vmatpush.msra.mxu1 %v1561_v24 }
  0x9f   : > { %747 = vmatpush.msra.mxu1 %v1567_v25 }
  0xa1   : > { %748 = vmatpush.msra.mxu1 %v1573_v26 }
  0xa3   : > { %749 = vmatpush.msra.mxu1 %v1575_v27 }
  0xcc   : > { %v424_v34 = vpop.f32.mrf.mxu0 }
  0xcd   : > { %v425_v35 = vadd.f32 %v1064_v33, %v424_v34 }
  0xcf   : > { %554 = vst [vmem:[#allocation2 + $0x31] sm:$0x80] %v425_v35 }
  0xd4   : > { %v427_v36 = vpop.f32.mrf.mxu0 }
  0xd5   : > { %v428_v37 = vadd.f32 %v1064_v33, %v427_v36 }
  0xd7   : > { %v456_v38 = vrot.slane %v428_v37, 7 }
  0xd9   : > { %v534_v39 = vsel %vm475_vm1, %v456_v38, %v425_v35  ;;  %v523_v43 = vsel %vm472_vm2, %v456_v38, %v425_v35  ;;  %v512_v48 = vsel %vm469_vm3, %v456_v38, %v425_v35  ;;  %v501_v53 = vsel %vm466_vm4, %v456_v38, %v425_v35 }
  0xda   : > { %543 = vst [vmem:[#allocation2 + $0x2a] sm:$0xc0] %v534_v39  ;;  %v490_v59 = vsel %vm463_vm5, %v456_v38, %v425_v35  ;;  %v479_v2 = vsel %vm460_vm6, %v456_v38, %v425_v35  ;;  %v458_v11 = vsel %vm457_vm7, %v456_v38, %v425_v35 }
  0xdc   : > { %v430_v40 = vpop.f32.mrf.mxu0 }
  0xdd   : > { %v431_v41 = vadd.f32 %v1064_v33, %v430_v40 }
  0xdf   : > { %v459_v42 = vrot.slane %v431_v41, 6 }
  0xe0   : > { %v590_v25 = vpop.f32.mrf.mxu1 }
  0xe1   : > { %v524_v44 = vsel %vm475_vm1, %v459_v42, %v523_v43  ;;  %v513_v49 = vsel %vm472_vm2, %v459_v42, %v512_v48  ;;  %v502_v54 = vsel %vm469_vm3, %v459_v42, %v501_v53  ;;  %v491_v61 = vsel %vm466_vm4, %v459_v42, %v490_v59 }
  0xe2   : > { %532 = vst [vmem:[#allocation2 + $0x23] sm:$0xe0] %v524_v44  ;;  %v480_v4 = vsel %vm463_vm5, %v459_v42, %v479_v2  ;;  %v461_v12 = vsel %vm460_vm6, %v459_v42, %v458_v11  ;;  %v545_v14 = vsel %vm457_vm7, %v459_v42, %v456_v38 }
  0xe4   : > { %v433_v45 = vpop.f32.mrf.mxu0 }
  0xe5   : > { %v434_v46 = vadd.f32 %v1064_v33, %v433_v45 }
  0xe7   : > { %v462_v47 = vrot.slane %v434_v46, 5 }
  0xe9   : > { %v514_v50 = vsel %vm475_vm1, %v462_v47, %v513_v49  ;;  %v503_v56 = vsel %vm472_vm2, %v462_v47, %v502_v54  ;;  %v492_v62 = vsel %vm469_vm3, %v462_v47, %v491_v61  ;;  %v481_v6 = vsel %vm466_vm4, %v462_v47, %v480_v4 }
  0xea   : > { %521 = vst [vmem:[#allocation2 + $0x1c] sm:$0xf0] %v514_v50  ;;  %v464_v15 = vsel %vm463_vm5, %v462_v47, %v461_v12  ;;  %v535_v17 = vsel %vm457_vm7, %v462_v47, %v459_v42  ;;  %v546_v18 = vsel %vm460_vm6, %v462_v47, %v545_v14 }
  0xec   : > { %v436_v51 = vpop.f32.mrf.mxu0 }
  0xed   : > { %v437_v52 = vadd.f32 %v1064_v33, %v436_v51 }
  0xef   : > { %v465_v55 = vrot.slane %v437_v52, 4 }
  0xf1   : > { %v504_v57 = vsel %vm475_vm1, %v465_v55, %v503_v56  ;;  %v493_v0 = vsel %vm472_vm2, %v465_v55, %v492_v62  ;;  %v482_v7 = vsel %vm469_vm3, %v465_v55, %v481_v6  ;;  %v467_v19 = vsel %vm466_vm4, %v465_v55, %v464_v15 }
  0xf2   : > { %510 = vst [vmem:[#allocation2 + $0x15] sm:$0xf8] %v504_v57  ;;  %v525_v20 = vsel %vm457_vm7, %v465_v55, %v462_v47  ;;  %v536_v21 = vsel %vm460_vm6, %v465_v55, %v535_v17  ;;  %v547_v22 = vsel %vm463_vm5, %v465_v55, %v546_v18 }
  0xf4   : > { %v439_v58 = vpop.f32.mrf.mxu0 }
  0xf5   : > { %v440_v60 = vadd.f32 %v1064_v33, %v439_v58 }
  0xf7   : > { %v468_v63 = vrot.slane %v440_v60, 3 }
  0xf9   : > { %v494_v1 = vsel %vm475_vm1, %v468_v63, %v493_v0  ;;  %v483_v9 = vsel %vm472_vm2, %v468_v63, %v482_v7  ;;  %v470_v23 = vsel %vm469_vm3, %v468_v63, %v467_v19  ;;  %v515_v26 = vsel %vm457_vm7, %v468_v63, %v465_v55 }
  0xfa   : > { %499 = vst [vmem:[#allocation2 + $0xe] sm:$0xfc] %v494_v1  ;;  %v526_v27 = vsel %vm460_vm6, %v468_v63, %v525_v20  ;;  %v537_v34 = vsel %vm463_vm5, %v468_v63, %v536_v21  ;;  %v548_v38 = vsel %vm466_vm4, %v468_v63, %v547_v22 }
  0xfc   : > { %v442_v3 = vpop.f32.mrf.mxu0 }
  0xfd   : > { %v443_v5 = vadd.f32 %v1064_v33, %v442_v3 }
  0xff   : > { %v471_v8 = vrot.slane %v443_v5, 2 }
 0x101   : > { %v484_v10 = vsel %vm475_vm1, %v471_v8, %v483_v9  ;;  %v473_v28 = vsel %vm472_vm2, %v471_v8, %v470_v23  ;;  %v505_v29 = vsel %vm457_vm7, %v471_v8, %v468_v63  ;;  %v516_v30 = vsel %vm460_vm6, %v471_v8, %v515_v26 }
 0x102   : > { %488 = vst [vmem:[#allocation2 + $0x7] sm:$0xfe] %v484_v10  ;;  %v527_v35 = vsel %vm463_vm5, %v471_v8, %v526_v27  ;;  %v538_v39 = vsel %vm466_vm4, %v471_v8, %v537_v34  ;;  %v549_v41 = vsel %vm469_vm3, %v471_v8, %v548_v38 }
 0x104   : > { %v445_v13 = vpop.f32.mrf.mxu0 }
 0x105   : > { %v446_v16 = vadd.f32 %v1064_v33, %v445_v13 }
 0x107   : > { %v474_v24 = vrot.slane %v446_v16, 1 }
 0x109   : > { %v476_v31 = vsel %vm475_vm1, %v474_v24, %v473_v28  ;;  %489 = vst [vmem:[#allocation2 + $0xf] sm:$0x1] %v474_v24  ;;  %v495_v32 = vsel %vm457_vm7, %v474_v24, %v471_v8  ;;  %v506_v33 = vsel %vm460_vm6, %v474_v24, %v505_v29  ;;  %v517_v36 = vsel %vm463_vm5, %v474_v24, %v516_v30 }
 0x10a   : > { %v593_v37 = vadd.f32 %v590_v25, %v476_v31  ;;  %500 = vst [vmem:[#allocation2 + $0x16] sm:$0x3] %v495_v32  ;;  %v528_v40 = vsel %vm466_vm4, %v474_v24, %v527_v35  ;;  %v539_v42 = vsel %vm469_vm3, %v474_v24, %v538_v39  ;;  %v550_v43 = vsel %vm472_vm2, %v474_v24, %v549_v41 }
 0x10b   : > { %511 = vst [vmem:[#allocation2 + $0x1d] sm:$0x7] %v506_v33 }
 0x10c   : > { %1065 = vtanh.f32 %v593_v37  ;;  %522 = vst [vmem:[#allocation2 + $0x24] sm:$0xf] %v517_v36 }
 0x10d   : > { %533 = vst [vmem:[#allocation2 + $0x2b] sm:$0x1f] %v528_v40 }
 0x10e   : > { %544 = vst [vmem:[#allocation2 + $0x32] sm:$0x3f] %v539_v42 }
 0x10f   : > { %555 = vst [vmem:[#allocation2 + $0x39] sm:$0x7f] %v550_v43 }
 0x110   : > { %v595_v45 = vld [vmem:[#allocation2 + $0x8] sm:$0xff] }
 0x111   : > { %v618_v49 = vld [vmem:[#allocation2 + $0x10] sm:$0xff] }
 0x112   : > { %v1066_v44 = vpop.eup %1065  ;;  %v641_v53 = vld [vmem:[#allocation2 + $0x18] sm:$0xff] }
 0x113   : > { %612 = vmatmul.f32.vlgmr.msra.gmra.mxu2 %v1066_v44  ;;  %v664_v57 = vld [vmem:[#allocation2 + $0x20] sm:$0xff] }
 0x114   : > { %v687_v61 = vld [vmem:[#allocation2 + $0x28] sm:$0xff] }
 0x115   : > { %v710_v1 = vld [vmem:[#allocation2 + $0x30] sm:$0xff] }
 0x116   : > { %v733_v5 = vld [vmem:[#allocation2 + $0x38] sm:$0xff] }
 0x196   : > { %v613_v46 = vpop.f32.mrf.mxu2 }
 0x197   : > { %v616_v47 = vadd.f32 %v613_v46, %v595_v45 }
 0x199   : > { %1067 = vtanh.f32 %v616_v47 }
 0x19f   : > { %v1068_v48 = vpop.eup %1067 }
 0x1a0   : > { %635 = vmatmul.f32.vlgmr.msra.gmra.mxu3 %v1068_v48 }
 0x223   : > { %v636_v50 = vpop.f32.mrf.mxu3 }
 0x224   : > { %v639_v51 = vadd.f32 %v636_v50, %v618_v49 }
 0x226   : > { %1069 = vtanh.f32 %v639_v51 }
 0x22c   : > { %v1070_v52 = vpop.eup %1069 }
 0x22d   : > { %658 = vmatmul.f32.vlgmr.msrb.gmra.mxu1 %v1070_v52 }
 0x2aa   : > { %v659_v54 = vpop.f32.mrf.mxu1 }
 0x2ab   : > { %v662_v55 = vadd.f32 %v659_v54, %v641_v53 }
 0x2ad   : > { %1071 = vtanh.f32 %v662_v55 }
 0x2b3   : > { %v1072_v56 = vpop.eup %1071 }
 0x2b4   : > { %681 = vmatmul.f32.vlgmr.msrb.gmra.mxu2 %v1072_v56 }
 0x337   : > { %v682_v58 = vpop.f32.mrf.mxu2 }
 0x338   : > { %v685_v59 = vadd.f32 %v682_v58, %v664_v57 }
 0x33a   : > { %1073 = vtanh.f32 %v685_v59 }
 0x340   : > { %v1074_v60 = vpop.eup %1073 }
 0x341   : > { %704 = vmatmul.f32.vlgmr.msrb.gmra.mxu3 %v1074_v60 }
 0x3c4   : > { %v705_v62 = vpop.f32.mrf.mxu3 }
 0x3c5   : > { %v708_v63 = vadd.f32 %v705_v62, %v687_v61 }
 0x3c7   : > { %1075 = vtanh.f32 %v708_v63 }
 0x3cd   : > { %v1076_v0 = vpop.eup %1075 }
 0x3ce   : > { %727 = vmatmul.f32.vlgmr.msrb.gmra.mxu0 %v1076_v0 }
 0x44b   : > { %v728_v2 = vpop.f32.mrf.mxu0 }
 0x44c   : > { %v731_v3 = vadd.f32 %v728_v2, %v710_v1 }
 0x44e   : > { %1077 = vtanh.f32 %v731_v3 }
 0x454   : > { %v1078_v4 = vpop.eup %1077 }
 0x455   : > { %750 = vmatmul.f32.vlgmr.msra.gmra.mxu1 %v1078_v4 }
 0x4d2   : > { %v751_v6 = vpop.f32.mrf.mxu1 }
 0x4d3   : > { %v754_v7 = vadd.f32 %v751_v6, %v733_v5 }
 0x4d5   : > { %1079 = vtanh.f32 %v754_v7 }
 0x4db   : > { %v1080_v8 = vpop.eup %1079 }
 0x4dc   : > { %756 = vst [vmem:[#allocation3] sm:$0xff] %v1080_v8 }
 0x4dd PF: > { %v773_v9 = vld [vmem:[%s1474_s2 + $0x78] sm:$0xff]  ;;  %v772_v10 = vld [vmem:[%s1474_s2 + $0x70] sm:$0xff]  ;;  %v771_v11 = vld [vmem:[%s1474_s2 + $0x68] sm:$0xff]  ;;  %s964_s10 = sshll.u32 %s1284_s24, 3  ;;  %s814_s0 = sshll.u32 %s1489_s18, 4  ;;  %s815_s0 = int_to_ptr.vmem [resolvable:$true] %s814_s0 }
 0x4de   : > { %778 = vmatpush.msra.mxu0 %v773_v9  ;;  %v770_v12 = vld [vmem:[%s1474_s2 + $0x60] sm:$0xff]  ;;  %v769_v13 = vld [vmem:[%s1474_s2 + $0x58] sm:$0xff]  ;;  %v768_v14 = vld [vmem:[%s1474_s2 + $0x50] sm:$0xff]  ;;  %s812_s14 = scalar_lea.hbm %s1779_s6, %s964_s10  ;;  %s1222_s9 = scalar_lea.hbm %s1779_s6, 16 }
 0x4df   : > { %v767_v15 = vld [vmem:[%s1474_s2 + $0x48] sm:$0xff]  ;;  %v766_v16 = vld [vmem:[%s1474_s2 + $0x40] sm:$0xff]  ;;  %v765_v17 = vld [vmem:[%s1474_s2 + $0x38] sm:$0xff]  ;;  %s816_s1 = sshll.u32 %s812_s14, 4  ;;  %s817_s1 = int_to_ptr.hbm [resolvable:$true] %s816_s1 }
 0x4e0   : > { %779 = vmatpush.msra.mxu0 %v772_v10  ;;  %v764_v18 = vld [vmem:[%s1474_s2 + $0x30] sm:$0xff]  ;;  %v763_v19 = vld [vmem:[%s1474_s2 + $0x28] sm:$0xff]  ;;  %v762_v20 = vld [vmem:[%s1474_s2 + $0x20] sm:$0xff]  ;;  %s1216_s29 = sshra.s32 %s817_s1, 4  ;;  %s1217_s29 = int_to_ptr.hbm [resolvable:$true] %s1216_s29 }
 0x4e1   : > { %v761_v21 = vld [vmem:[%s1474_s2 + $0x18] sm:$0xff]  ;;  %v760_v22 = vld [vmem:[%s1474_s2 + $0x10] sm:$0xff]  ;;  %v759_v23 = vld [vmem:[%s1474_s2 + $0x8] sm:$0xff]  ;;  %s1218_s24 = scalar_lea.hbm %s1217_s29, 8  ;;  %p1223_p13 = scmp.lt.s32.totalorder %s1217_s29, %s1779_s6 }
 0x4e2   : > { %780 = vmatpush.msra.mxu0 %v771_v11  ;;  %v758_v24 = vld [vmem:[%s1474_s2] sm:$0xff]  ;;  %v1081_v26 = vld [vmem:[%s357_s17] ss:$0 sm:$0xff]  ;;  %s800_s2 = scalar_lea.sflag [#allocation6], %s1470_s19  ;;  %p1219_p4 = scmp.ne.s32.totalorder %s1217_s29, %s1218_s24 }
 0x4e3   : > { %v757_v25 = vld [vmem:[#allocation3] sm:$0xff]  ;;  %p1224_p0 = scmp.lt.s32.totalorder %s1222_s9, %s1218_s24 }
 0x4e4   : > { %781 = vmatpush.msra.mxu0 %v770_v12  ;;  %p1220_p11 = pnand %p1219_p4, %p1440_p5 }
 0x4e5   : > { %p1225_p3 = por %p1224_p0, %p1223_p13 }
 0x4e6   : > { %782 = vmatpush.msra.mxu0 %v769_v13  ;;  %p1221_p12 = pneg %p1220_p11 }
 0x4e8   : > { %783 = vmatpush.msra.mxu0 %v768_v14  ;;  %p1226_p7 = pnand %p1225_p3, %p1221_p12 }
 0x4ea   : > { %784 = vmatpush.msra.mxu0 %v767_v15 }
 0x4ec   : > { %785 = vmatpush.msra.mxu0 %v766_v16 }
 0x4ee   : > { %786 = vmatpush.msra.mxu0 %v765_v17 }
 0x4f0   : > { %787 = vmatpush.msra.mxu0 %v764_v18 }
 0x4f2   : > { %788 = vmatpush.msra.mxu0 %v763_v19 }
 0x4f4   : > { %789 = vmatpush.msra.mxu0 %v762_v20 }
 0x4f6   : > { %790 = vmatpush.msra.mxu0 %v761_v21 }
 0x4f8   : > { %791 = vmatpush.msra.mxu0 %v760_v22 }
 0x4fa   : > { %792 = vmatpush.msra.mxu0 %v759_v23 }
 0x4fc   : > { %793 = vmatpush.msra.mxu0 %v758_v24 }
 0x4fd   : > { %794 = vmatmul.f32.vlgmr.msra.gmra.mxu0 %v757_v25 }
 0x57a   : > { %v795_v27 = vpop.f32.mrf.mxu0 }
 0x57b   : > { %v796_v28 = vadd.f32 %v1081_v26, %v795_v27 }
 0x57d   : > { %798 = vst [vmem:[%s1489_s18] sm:$0xff] %v796_v28 }
 0x57e   : > { %1229 = shalt.err (!%p1226_p7)
}
 0x57f   : > { %981 = dma.vmem_to_hbm [thread:$0]  (%p1440_p5), %s815_s0, 128, %s817_s1, %s800_s2  }
 0x580 PF: > { %s828_s19 = sand.u32 1, %s1272_s21   ;;  %p998_p9 = pnand %p945_p10, %p1385_p6 }
 0x581   : > { %s829_s18 = scalar_lea.sflag [#allocation6], %s828_s19 }
 0x582   : > { %p999_p2 = pneg %p998_p9 }
 0x584   : > { %1267 = dma.done.wait (%p999_p2), %s829_s18, 128  }
 0x585   : > { %1269 = vsyncadd (%p999_p2), %s829_s18, 4294967168  ;;  %s24_s26 = sadd.s32 1, %s1292_s26   ;;  %s1800_s15 = sld [smem:[#allocation17_spill]] }
 0x586   : > { %p21_p1 = scmp.ge.s32.totalorder %s24_s26, 4   ;;  %s1801_s21 = smov %s1276_s22 }
 0x587   : > { %s1802_s22 = smov %s1280_s23  ;;  %s1803_s23 = smov %s1449_s11 }
 0x588   : > { %s1804_s24 = smov %s1288_s25  ;;  %23 = sbr.rel (!%p21_p1) target bundleno = 12 (0xc), region = 117 }
 0x58b   : > { %s1805_s25 = smov %s1800_s15 }
 0x58d   :  { %835 = vsyncpa [#allocation5], 1 }
 0x58e   :  { %837 = vsyncpa [#allocation5 + $0x1], 1 }
 0x58f   :  { %838 = vsyncpa [#allocation8], 1 }
 0x590   :  { %839 = vsyncpa [#allocation11], 1 }
 0x591   :  { %841 = vsyncpa [#allocation11 + $0x1], 1 }
 0x592   :  { %842 = vsyncpa [#allocation6], 1 }
 0x593   :  { %844 = vsyncpa [#allocation6 + $0x1], 1 }

// kernel: tpu_custom_call.1
= control target key start
LH: loop header
LB: loop body
LE: loop exit
PB: predicated region body
PF: predicated region fallthrough
CT: control target
= control target key end

     0   :  { %s1773_s0 = inlined_call_operand.hbm [shape: f32[8,8,64], index: 0, kind: input, shape index: {}]   ;;  %s1774_s1 = inlined_call_operand.hbm [shape: f32[64,128], index: 1, kind: input, shape index: {}]   ;;  %s1775_s2 = inlined_call_operand.hbm [shape: f32[128,128], index: 2, kind: input, shape index: {}]   ;;  %s1776_s3 = inlined_call_operand.vmem [shape: f32[1,128], index: 3, kind: input, shape index: {}]   ;;  %s1777_s4 = inlined_call_operand.hbm [shape: f32[128,256], index: 4, kind: input, shape index: {}]   ;;  %s1778_s5 = inlined_call_operand.vmem [shape: f32[1,256], index: 5, kind: input, shape index: {}]   ;;  %s1779_s6 = inlined_call_operand.hbm [shape: f32[8,256], index: 6, kind: output, shape index: {}]  }
   0x1   :  { %1783 = sst [smem:[#allocation18_spill]] %s1773_s0 }
   0x2   :  { %1784 = sst [smem:[#allocation19_spill]] %s1774_s1 }
   0x3   :  { %1785 = sst [smem:[#allocation20_spill]] %s1775_s2 }
   0x4   :  { %11 = vsyncpa [#allocation5], 0 }
   0x5   :  { %12 = vsyncpa [#allocation8], 0 }
   0x6   :  { %13 = vsyncpa [#allocation11], 0 }
   0x7   :  { %15 = vsyncpa [#allocation11 + $0x1], 0 }
   0x8   :  { %16 = vsyncpa [#allocation6], 0 }
   0x9   :  { %18 = vsyncpa [#allocation6 + $0x1], 0  ;;  %s1336_s21 = smov 0   ;;  %s1338_s22 = smov 0  }
   0xa   :  { %s1340_s23 = smov 0   ;;  %s1342_s24 = smov 0  }
   0xb   :  { %s1344_s25 = smov 0   ;;  %s1346_s26 = smov 0  }
   0xc LB: > { %s939_s27 = sadd.s32 4294967295, %s1292_s26   ;;  %s940_s28 = sadd.s32 4294967294, %s1292_s26   ;;  %s1292_s26 = sphi %s1346_s26, %s24_s26   ;;  %s1288_s25 = sphi %s1344_s25, %s1805_s25   ;;  %s1284_s24 = sphi %s1342_s24, %s1804_s24   ;;  %s1280_s23 = sphi %s1340_s23, %s1803_s23   ;;  %s1276_s22 = sphi %s1338_s22, %s1802_s22   ;;  %s1272_s21 = sphi %s1336_s21, %s1801_s21  }
   0xd   : > { %p145_p0 = scmp.ne.s32.totalorder %s1276_s22, %s1272_s21  ;;  %p1370_p1 = scmp.eq.s32.totalorder %s939_s27, 0 }
   0xe   : > { %p1374_p2 = scmp.eq.s32.totalorder %s939_s27, 1  ;;  %p203_p3 = scmp.eq.s32.totalorder %s940_s28, 1 }
   0xf   : > { %p1380_p4 = por %p1370_p1, %p145_p0  ;;  %p941_p5 = scmp.ge.s32.totalorder %s1292_s26, 1 }
  0x10   : > { %p1385_p6 = por %p203_p3, %p145_p0  ;;  %p210_p7 = scmp.lt.s32.totalorder %s1292_s26, 3 }
  0x11   : > { %s1791_s1 = sld [smem:[#allocation19_spill]]  ;;  %s1294_s13 = smov [#allocation7]  }
  0x12   : > { %p1390_p8 = pnand %p941_p5, %p210_p7  ;;  %s240_s14 = sshll.u32 %s1294_s13, 4  ;;  %s241_s14 = int_to_ptr.vmem [resolvable:$true] %s240_s14 }
  0x13   : > { %p945_p10 = scmp.ge.s32.totalorder %s1292_s26, 2  ;;  %s1793_s0 = sld [smem:[#allocation18_spill]] }
  0x14   : > { %p983_p9 = pneg %p1390_p8  ;;  %s1780_s19 = smov 128  }
  0x15   : > { %s1781_s20 = smov 8   ;;  %s1297_s27 = smov [#allocation4]  }
  0x16   : > { %p1402_p11 = pnand %p983_p9, %p1370_p1  ;;  %s226_s28 = sshll.u32 %s1297_s27, 4  ;;  %s227_s28 = int_to_ptr.vmem [resolvable:$true] %s226_s28 }
  0x17   : > { %s238_s12 = sshll.u32 %s1791_s1, 4  ;;  %s1794_s2 = sld [smem:[#allocation20_spill]]  ;;  %s239_s12 = int_to_ptr.hbm [resolvable:$true] %s238_s12 }
  0x18   : > { %989 = dma.hbm_to_vmem [thread:$0]  (!%p1402_p11), %s239_s12, 1024, %s241_s14, [#allocation8], %s1780_s19, %s1780_s19, %s1781_s20  }
  0x19   : > { %s224_s18 = sshll.u32 %s1793_s0, 4  ;;  %s1298_s12 = smov [#allocation9]   ;;  %s225_s18 = int_to_ptr.hbm [resolvable:$true] %s224_s18 }
  0x1a   : > { %986 = dma.hbm_to_vmem [thread:$0]  (!%p1402_p11), %s225_s18, 1024, %s227_s28, [#allocation5], %s1780_s19, %s1780_s19, %s1781_s20  }
  0x1b   : > { %s254_s14 = sshll.u32 %s1298_s12, 4  ;;  %s33_s16 = sadd.s32 1, %s1288_s25  ;;  %s255_s14 = int_to_ptr.vmem [resolvable:$true] %s254_s14 }
  0x1c   : > { %p34_p12 = scmp.ge.s32.totalorder %s33_s16, 2  ;;  %s132_s17 = sadd.s32 1, %s1280_s23 }
  0x1d   : > { %s252_s13 = sshll.u32 %s1794_s2, 4  ;;  %p139_p13 = scmp.ne.s32.totalorder %s1280_s23, %s1276_s22  ;;  %s253_s13 = int_to_ptr.hbm [resolvable:$true] %s252_s13 }
  0x1e   : > { %992 = dma.hbm_to_vmem [thread:$0]  (!%p1402_p11), %s253_s13, 2048, %s255_s14, [#allocation8], %s1780_s19, %s1780_s19, %s1781_s20  }
  0x1f   : > { %p140_p0 = scmp.eq.s32.totalorder %s1292_s26, 0  ;;  %s1807_s16 = smov (%p34_p12, %s33_s16), 0 }
  0x20   : > { %1795 = sst [smem:[#allocation17_spill]] %s1807_s16  ;;  %p1440_p5 = por %p1374_p2, %p139_p13 }
  0x21   : > { %p1434_p3 = por %p140_p0, %p139_p13  ;;  %s129_s27 = ssub.s32 %s1288_s25, %s1807_s16 }
  0x22   : > { %p1004_p7 = scmp.lt.s32.totalorder %s1292_s26, 2  ;;  %p130_p9 = scmp.eq.s32.totalorder %s129_s27, 0 }
  0x23   : > { %s271_s28 = sand.u32 1, %s1280_s23   ;;  %s947_s13 = sshll.u32 %s1288_s25, 3 }
  0x24   : > { %s946_s10 = sshll.u32 %s271_s28, 7  ;;  %s279_s19 = scalar_lea.hbm %s1777_s4, %s947_s13 }
  0x25   : > { %s1449_s11 = scalar_select %p130_p9, %s1280_s23, %s132_s17  }
  0x26   : > { %s275_s20 = scalar_lea.vmem [#allocation10], %s946_s10  ;;  %s280_s30 = sshll.u32 %s279_s19, 4  ;;  %s281_s30 = int_to_ptr.hbm [resolvable:$true] %s280_s30 }
  0x27   : > { %s282_s0 = sshll.u32 %s275_s20, 4  ;;  %p994_p2 = pnand %p1004_p7, %p1434_p3  ;;  %s283_s0 = int_to_ptr.vmem [resolvable:$true] %s282_s0 }
  0x28   : > { %s272_s1 = scalar_lea.sflag [#allocation11], %s271_s28  ;;  %s1299_s2 = smov 256  }
  0x29   : > { %s1798_s16 = smov 8   ;;  %s1799_s27 = smov 128  }
  0x2a   : > { %996 = dma.hbm_to_vmem [thread:$0]  (!%p994_p2), %s281_s30, 2048, %s283_s0, %s272_s1, %s1299_s2, %s1799_s27, %s1798_s16  }
  0x2b   : > { %300 = sbr.rel (%p1390_p8) target bundleno = 1408 (0x580), region = 44 }
  0x30   : > { %1255 = dma.done.wait (%p1370_p1), [#allocation5], 1024  }
  0x31   : > { %1257 = vsyncadd (%p1370_p1), [#allocation5], 4294966272 }
  0x32   : > { %1259 = dma.done.wait (%p1370_p1), [#allocation8], 3072  }
  0x33   : > { %1261 = vsyncadd (%p1370_p1), [#allocation8], 4294964224  ;;  %s1470_s19 = sand.u32 1, %s1276_s22  }
  0x34   : > { %s952_s0 = sshll.u32 %s1470_s19, 7  ;;  %s318_s1 = scalar_lea.sflag [#allocation11], %s1470_s19 }
  0x35   : > { %s1474_s2 = scalar_lea.vmem [#allocation10], %s952_s0 }
  0x36   : > { %1263 = dma.done.wait (%p1380_p4), %s318_s1, 2048  }
  0x37   : > { %1265 = vsyncadd (%p1380_p4), %s318_s1, 4294965248  ;;  %s953_s29 = sshll.u32 %s1470_s19, 3  ;;  %p355_p1 = scmp.lt.s32.totalorder %s1284_s24, 1 }
  0x38   : > { %s1489_s18 = scalar_lea.vmem [#allocation12], %s953_s29  ;;  %p954_p8 = scmp.ne.s32.totalorder %s1284_s24, 0 }
  0x39   : > { %s1483_s9 = scalar_select %p355_p1, %s1284_s24, 1 }
  0x3a   : > { %361 = sbr.rel (%p954_p8) target bundleno = 1245 (0x4dd), region = 64 }
  0x3b   : > { %s357_s17 = scalar_lea.vmem %s1778_s5, %s1483_s9 }
  0x3f   : > { %v369_v0 = vld [vmem:[#allocation7 + $0x38] sm:$0xff]  ;;  %v368_v1 = vld [vmem:[#allocation7 + $0x30] sm:$0xff]  ;;  %v367_v2 = vld [vmem:[#allocation7 + $0x28] sm:$0xff]  ;;  %vm382_vm0 = vcmask 523264   ;;  %v1300_v29 = vmov 0.0   ;;  %vm475_vm1 = vcmask 1047559  }
  0x40   : > { %415 = vmatpush.msra.mxu0 %v369_v0  ;;  %v366_v3 = vld [vmem:[#allocation7 + $0x20] sm:$0xff]  ;;  %v365_v4 = vld [vmem:[#allocation7 + $0x18] sm:$0xff]  ;;  %v364_v5 = vld [vmem:[#allocation7 + $0x10] sm:$0xff]  ;;  %vm472_vm2 = vcmask 1046534   ;;  %vm469_vm3 = vcmask 1045509   ;;  %vm466_vm4 = vcmask 1044484  }
  0x41   : > { %v363_v6 = vld [vmem:[#allocation7 + $0x8] sm:$0xff]  ;;  %v362_v7 = vld [vmem:[#allocation7] sm:$0xff]  ;;  %v1492_v9 = vld [vmem:[#allocation9 + $0x78] sm:$0xff]  ;;  %vm463_vm5 = vcmask 1043459   ;;  %vm460_vm6 = vcmask 1042434   ;;  %vm457_vm7 = vcmask 1041409  }
  0x42   : > { %416 = vmatpush.msra.mxu0 %v368_v1  ;;  %v371_v8 = vld [vmem:[#allocation4] sm:$0xff]  ;;  %573 = vmatpush.msra.mxu1 %v1492_v9  ;;  %v1496_v10 = vld [vmem:[#allocation9 + $0x70] sm:$0xff]  ;;  %v1501_v11 = vld [vmem:[#allocation9 + $0x68] sm:$0xff] }
  0x43   : > { %596 = vmatpush.msra.mxu2 %v1492_v9  ;;  %619 = vmatpush.msra.mxu3 %v1492_v9  ;;  %v1507_v12 = vld [vmem:[#allocation9 + $0x60] sm:$0xff]  ;;  %v372_v13 = vld [vmem:[#allocation4 + $0x8] sm:$0xff]  ;;  %v1513_v14 = vld [vmem:[#allocation9 + $0x58] sm:$0xff] }
  0x44   : > { %417 = vmatpush.msra.mxu0 %v367_v2  ;;  %574 = vmatpush.msra.mxu1 %v1496_v10  ;;  %v1519_v15 = vld [vmem:[#allocation9 + $0x50] sm:$0xff]  ;;  %v1525_v16 = vld [vmem:[#allocation9 + $0x48] sm:$0xff]  ;;  %v1531_v17 = vld [vmem:[#allocation9 + $0x40] sm:$0xff] }
  0x45   : > { %597 = vmatpush.msra.mxu2 %v1496_v10  ;;  %620 = vmatpush.msra.mxu3 %v1496_v10  ;;  %v373_v18 = vld [vmem:[#allocation4 + $0x10] sm:$0xff]  ;;  %v1537_v19 = vld [vmem:[#allocation9 + $0x38] sm:$0xff]  ;;  %v1549_v21 = vld [vmem:[#allocation9 + $0x28] sm:$0xff] }
  0x46   : > { %418 = vmatpush.msra.mxu0 %v366_v3  ;;  %575 = vmatpush.msra.mxu1 %v1501_v11  ;;  %v1543_v20 = vld [vmem:[#allocation9 + $0x30] sm:$0xff]  ;;  %v1555_v22 = vld [vmem:[#allocation9 + $0x20] sm:$0xff]  ;;  %v374_v23 = vld [vmem:[#allocation4 + $0x18] sm:$0xff] }
  0x47   : > { %598 = vmatpush.msra.mxu2 %v1501_v11  ;;  %621 = vmatpush.msra.mxu3 %v1501_v11  ;;  %v1561_v24 = vld [vmem:[#allocation9 + $0x18] sm:$0xff]  ;;  %v1567_v25 = vld [vmem:[#allocation9 + $0x10] sm:$0xff]  ;;  %v1573_v26 = vld [vmem:[#allocation9 + $0x8] sm:$0xff] }
  0x48   : > { %419 = vmatpush.msra.mxu0 %v365_v4  ;;  %576 = vmatpush.msra.mxu1 %v1507_v12  ;;  %v1575_v27 = vld [vmem:[#allocation9] sm:$0xff]  ;;  %v376_v30 = vld [vmem:[#allocation4 + $0x28] sm:$0xff]  ;;  %v377_v31 = vld [vmem:[#allocation4 + $0x30] sm:$0xff] }
  0x49   : > { %599 = vmatpush.msra.mxu2 %v1507_v12  ;;  %622 = vmatpush.msra.mxu3 %v1507_v12  ;;  %v375_v28 = vld [vmem:[#allocation4 + $0x20] sm:$0xff]  ;;  %v378_v32 = vld [vmem:[#allocation4 + $0x38] sm:$0xff] }
  0x4a   : > { %420 = vmatpush.msra.mxu0 %v364_v5  ;;  %577 = vmatpush.msra.mxu1 %v1513_v14  ;;  %v1064_v33 = vld [vmem:[%s1776_s3] ss:$0 sm:$0xff] }
  0x4b   : > { %600 = vmatpush.msra.mxu2 %v1513_v14  ;;  %623 = vmatpush.msra.mxu3 %v1513_v14 }
  0x4c   : > { %421 = vmatpush.msra.mxu0 %v363_v6  ;;  %578 = vmatpush.msra.mxu1 %v1519_v15 }
  0x4d   : > { %601 = vmatpush.msra.mxu2 %v1519_v15  ;;  %624 = vmatpush.msra.mxu3 %v1519_v15 }
  0x4e   : > { %422 = vmatpush.msra.mxu0 %v362_v7  ;;  %579 = vmatpush.msra.mxu1 %v1525_v16 }
  0x4f   : > { %955 = vmatmul.msk.f32.vlgmr.msra.gmra.mxu0 %vm382_vm0, %v371_v8  ;;  %602 = vmatpush.msra.mxu2 %v1525_v16 }
  0x50   : > { %711 = vmatpush.msrb.mxu0 %v1492_v9  ;;  %625 = vmatpush.msra.mxu3 %v1525_v16 }
  0x51   : > { %580 = vmatpush.msra.mxu1 %v1531_v17  ;;  %603 = vmatpush.msra.mxu2 %v1531_v17 }
  0x52   : > { %712 = vmatpush.msrb.mxu0 %v1496_v10  ;;  %626 = vmatpush.msra.mxu3 %v1531_v17 }
  0x53   : > { %581 = vmatpush.msra.mxu1 %v1537_v19  ;;  %604 = vmatpush.msra.mxu2 %v1537_v19 }
  0x54   : > { %713 = vmatpush.msrb.mxu0 %v1501_v11  ;;  %627 = vmatpush.msra.mxu3 %v1537_v19 }
  0x55   : > { %582 = vmatpush.msra.mxu1 %v1543_v20  ;;  %605 = vmatpush.msra.mxu2 %v1543_v20 }
  0x56   : > { %714 = vmatpush.msrb.mxu0 %v1507_v12  ;;  %628 = vmatpush.msra.mxu3 %v1543_v20 }
  0x57   : > { %956 = vmatmul.msk.f32.gmra.mxu0 %vm382_vm0, %v372_v13  ;;  %583 = vmatpush.msra.mxu1 %v1549_v21 }
  0x58   : > { %715 = vmatpush.msrb.mxu0 %v1513_v14  ;;  %606 = vmatpush.msra.mxu2 %v1549_v21 }
  0x59   : > { %629 = vmatpush.msra.mxu3 %v1549_v21  ;;  %584 = vmatpush.msra.mxu1 %v1555_v22 }
  0x5a   : > { %716 = vmatpush.msrb.mxu0 %v1519_v15  ;;  %607 = vmatpush.msra.mxu2 %v1555_v22 }
  0x5b   : > { %630 = vmatpush.msra.mxu3 %v1555_v22  ;;  %585 = vmatpush.msra.mxu1 %v1561_v24 }
  0x5c   : > { %717 = vmatpush.msrb.mxu0 %v1525_v16  ;;  %608 = vmatpush.msra.mxu2 %v1561_v24 }
  0x5d   : > { %631 = vmatpush.msra.mxu3 %v1561_v24  ;;  %586 = vmatpush.msra.mxu1 %v1567_v25 }
  0x5e   : > { %718 = vmatpush.msrb.mxu0 %v1531_v17  ;;  %609 = vmatpush.msra.mxu2 %v1567_v25 }
  0x5f   : > { %957 = vmatmul.msk.f32.gmra.mxu0 %vm382_vm0, %v373_v18  ;;  %632 = vmatpush.msra.mxu3 %v1567_v25 }
  0x60   : > { %719 = vmatpush.msrb.mxu0 %v1537_v19  ;;  %587 = vmatpush.msra.mxu1 %v1573_v26 }
  0x61   : > { %610 = vmatpush.msra.mxu2 %v1573_v26  ;;  %633 = vmatpush.msra.mxu3 %v1573_v26 }
  0x62   : > { %720 = vmatpush.msrb.mxu0 %v1543_v20  ;;  %588 = vmatpush.msra.mxu1 %v1575_v27 }
  0x63   : > { %589 = vmatmul.f32.vlgmr.msra.gmra.mxu1 %v1300_v29  ;;  %611 = vmatpush.msra.mxu2 %v1575_v27 }
  0x64   : > { %721 = vmatpush.msrb.mxu0 %v1549_v21  ;;  %634 = vmatpush.msra.mxu3 %v1575_v27 }
  0x65   : > { %642 = vmatpush.msrb.mxu1 %v1492_v9  ;;  %665 = vmatpush.msrb.mxu2 %v1492_v9 }
  0x66   : > { %688 = vmatpush.msrb.mxu3 %v1492_v9  ;;  %722 = vmatpush.msrb.mxu0 %v1555_v22 }
  0x67   : > { %958 = vmatmul.msk.f32.gmra.mxu0 %vm382_vm0, %v374_v23  ;;  %643 = vmatpush.msrb.mxu1 %v1496_v10 }
  0x68   : > { %666 = vmatpush.msrb.mxu2 %v1496_v10  ;;  %689 = vmatpush.msrb.mxu3 %v1496_v10 }
  0x69   : > { %644 = vmatpush.msrb.mxu1 %v1501_v11  ;;  %723 = vmatpush.msrb.mxu0 %v1561_v24 }
  0x6a   : > { %667 = vmatpush.msrb.mxu2 %v1501_v11  ;;  %690 = vmatpush.msrb.mxu3 %v1501_v11 }
  0x6b   : > { %645 = vmatpush.msrb.mxu1 %v1507_v12  ;;  %724 = vmatpush.msrb.mxu0 %v1567_v25 }
  0x6c   : > { %668 = vmatpush.msrb.mxu2 %v1507_v12  ;;  %691 = vmatpush.msrb.mxu3 %v1507_v12 }
  0x6d   : > { %646 = vmatpush.msrb.mxu1 %v1513_v14  ;;  %725 = vmatpush.msrb.mxu0 %v1573_v26 }
  0x6e   : > { %669 = vmatpush.msrb.mxu2 %v1513_v14  ;;  %692 = vmatpush.msrb.mxu3 %v1513_v14 }
  0x6f   : > { %959 = vmatmul.msk.f32.gmra.mxu0 %vm382_vm0, %v375_v28  ;;  %647 = vmatpush.msrb.mxu1 %v1519_v15 }
  0x70   : > { %670 = vmatpush.msrb.mxu2 %v1519_v15  ;;  %693 = vmatpush.msrb.mxu3 %v1519_v15 }
  0x71   : > { %648 = vmatpush.msrb.mxu1 %v1525_v16  ;;  %726 = vmatpush.msrb.mxu0 %v1575_v27 }
  0x72   : > { %671 = vmatpush.msrb.mxu2 %v1525_v16  ;;  %694 = vmatpush.msrb.mxu3 %v1525_v16 }
  0x73   : > { %649 = vmatpush.msrb.mxu1 %v1531_v17 }
  0x74   : > { %672 = vmatpush.msrb.mxu2 %v1531_v17  ;;  %695 = vmatpush.msrb.mxu3 %v1531_v17 }
  0x75   : > { %650 = vmatpush.msrb.mxu1 %v1537_v19 }
  0x76   : > { %673 = vmatpush.msrb.mxu2 %v1537_v19  ;;  %696 = vmatpush.msrb.mxu3 %v1537_v19 }
  0x77   : > { %960 = vmatmul.msk.f32.gmra.mxu0 %vm382_vm0, %v376_v30  ;;  %651 = vmatpush.msrb.mxu1 %v1543_v20 }
  0x78   : > { %674 = vmatpush.msrb.mxu2 %v1543_v20  ;;  %697 = vmatpush.msrb.mxu3 %v1543_v20 }
  0x79   : > { %652 = vmatpush.msrb.mxu1 %v1549_v21 }
  0x7a   : > { %675 = vmatpush.msrb.mxu2 %v1549_v21  ;;  %698 = vmatpush.msrb.mxu3 %v1549_v21 }
  0x7b   : > { %653 = vmatpush.msrb.mxu1 %v1555_v22 }
  0x7c   : > { %676 = vmatpush.msrb.mxu2 %v1555_v22  ;;  %699 = vmatpush.msrb.mxu3 %v1555_v22 }
  0x7d   : > { %654 = vmatpush.msrb.mxu1 %v1561_v24 }
  0x7e   : > { %677 = vmatpush.msrb.mxu2 %v1561_v24  ;;  %700 = vmatpush.msrb.mxu3 %v1561_v24 }
  0x7f   : > { %961 = vmatmul.msk.f32.gmra.mxu0 %vm382_vm0, %v377_v31  ;;  %655 = vmatpush.msrb.mxu1 %v1567_v25 }
  0x80   : > { %678 = vmatpush.msrb.mxu2 %v1567_v25  ;;  %701 = vmatpush.msrb.mxu3 %v1567_v25 }
  0x81   : > { %656 = vmatpush.msrb.mxu1 %v1573_v26 }
  0x82   : > { %679 = vmatpush.msrb.mxu2 %v1573_v26  ;;  %702 = vmatpush.msrb.mxu3 %v1573_v26 }
  0x83   : > { %657 = vmatpush.msrb.mxu1 %v1575_v27 }
  0x84   : > { %680 = vmatpush.msrb.mxu2 %v1575_v27  ;;  %703 = vmatpush.msrb.mxu3 %v1575_v27 }
  0x85   : > { %734 = vmatpush.msra.mxu1 %v1492_v9 }
  0x87   : > { %962 = vmatmul.msk.f32.gmra.mxu0 %vm382_vm0, %v378_v32  ;;  %735 = vmatpush.msra.mxu1 %v1496_v10 }
  0x89   : > { %736 = vmatpush.msra.mxu1 %v1501_v11 }
  0x8b   : > { %737 = vmatpush.msra.mxu1 %v1507_v12 }
  0x8d   : > { %738 = vmatpush.msra.mxu1 %v1513_v14 }
  0x8f   : > { %739 = vmatpush.msra.mxu1 %v1519_v15 }
  0x91   : > { %740 = vmatpush.msra.mxu1 %v1525_v16 }
  0x93   : > { %741 = vmatpush.msra.mxu1 %v1531_v17 }
  0x95   : > { %742 = vmatpush.msra.mxu1 %v1537_v19 }
  0x97   : > { %743 = vmatpush.msra.mxu1 %v1543_v20 }
  0x99   : > { %744 = vmatpush.msra.mxu1 %v1549_v21 }
  0x9b   : > { %745 = vmatpush.msra.mxu1 %v1555_v22 }
  0x9d   : > { %746 = vmatpush.msra.mxu1 %v1561_v24 }
  0x9f   : > { %747 = vmatpush.msra.mxu1 %v1567_v25 }
  0xa1   : > { %748 = vmatpush.msra.mxu1 %v1573_v26 }
  0xa3   : > { %749 = vmatpush.msra.mxu1 %v1575_v27 }
  0xcc   : > { %v424_v34 = vpop.f32.mrf.mxu0 }
  0xcd   : > { %v425_v35 = vadd.f32 %v1064_v33, %v424_v34 }
  0xcf   : > { %554 = vst [vmem:[#allocation2 + $0x31] sm:$0x80] %v425_v35 }
  0xd4   : > { %v427_v36 = vpop.f32.mrf.mxu0 }
  0xd5   : > { %v428_v37 = vadd.f32 %v1064_v33, %v427_v36 }
  0xd7   : > { %v456_v38 = vrot.slane %v428_v37, 7 }
  0xd9   : > { %v534_v39 = vsel %vm475_vm1, %v456_v38, %v425_v35  ;;  %v523_v43 = vsel %vm472_vm2, %v456_v38, %v425_v35  ;;  %v512_v48 = vsel %vm469_vm3, %v456_v38, %v425_v35  ;;  %v501_v53 = vsel %vm466_vm4, %v456_v38, %v425_v35 }
  0xda   : > { %543 = vst [vmem:[#allocation2 + $0x2a] sm:$0xc0] %v534_v39  ;;  %v490_v59 = vsel %vm463_vm5, %v456_v38, %v425_v35  ;;  %v479_v2 = vsel %vm460_vm6, %v456_v38, %v425_v35  ;;  %v458_v11 = vsel %vm457_vm7, %v456_v38, %v425_v35 }
  0xdc   : > { %v430_v40 = vpop.f32.mrf.mxu0 }
  0xdd   : > { %v431_v41 = vadd.f32 %v1064_v33, %v430_v40 }
  0xdf   : > { %v459_v42 = vrot.slane %v431_v41, 6 }
  0xe0   : > { %v590_v25 = vpop.f32.mrf.mxu1 }
  0xe1   : > { %v524_v44 = vsel %vm475_vm1, %v459_v42, %v523_v43  ;;  %v513_v49 = vsel %vm472_vm2, %v459_v42, %v512_v48  ;;  %v502_v54 = vsel %vm469_vm3, %v459_v42, %v501_v53  ;;  %v491_v61 = vsel %vm466_vm4, %v459_v42, %v490_v59 }
  0xe2   : > { %532 = vst [vmem:[#allocation2 + $0x23] sm:$0xe0] %v524_v44  ;;  %v480_v4 = vsel %vm463_vm5, %v459_v42, %v479_v2  ;;  %v461_v12 = vsel %vm460_vm6, %v459_v42, %v458_v11  ;;  %v545_v14 = vsel %vm457_vm7, %v459_v42, %v456_v38 }
  0xe4   : > { %v433_v45 = vpop.f32.mrf.mxu0 }
  0xe5   : > { %v434_v46 = vadd.f32 %v1064_v33, %v433_v45 }
  0xe7   : > { %v462_v47 = vrot.slane %v434_v46, 5 }
  0xe9   : > { %v514_v50 = vsel %vm475_vm1, %v462_v47, %v513_v49  ;;  %v503_v56 = vsel %vm472_vm2, %v462_v47, %v502_v54  ;;  %v492_v62 = vsel %vm469_vm3, %v462_v47, %v491_v61  ;;  %v481_v6 = vsel %vm466_vm4, %v462_v47, %v480_v4 }
  0xea   : > { %521 = vst [vmem:[#allocation2 + $0x1c] sm:$0xf0] %v514_v50  ;;  %v464_v15 = vsel %vm463_vm5, %v462_v47, %v461_v12  ;;  %v535_v17 = vsel %vm457_vm7, %v462_v47, %v459_v42  ;;  %v546_v18 = vsel %vm460_vm6, %v462_v47, %v545_v14 }
  0xec   : > { %v436_v51 = vpop.f32.mrf.mxu0 }
  0xed   : > { %v437_v52 = vadd.f32 %v1064_v33, %v436_v51 }
  0xef   : > { %v465_v55 = vrot.slane %v437_v52, 4 }
  0xf1   : > { %v504_v57 = vsel %vm475_vm1, %v465_v55, %v503_v56  ;;  %v493_v0 = vsel %vm472_vm2, %v465_v55, %v492_v62  ;;  %v482_v7 = vsel %vm469_vm3, %v465_v55, %v481_v6  ;;  %v467_v19 = vsel %vm466_vm4, %v465_v55, %v464_v15 }
  0xf2   : > { %510 = vst [vmem:[#allocation2 + $0x15] sm:$0xf8] %v504_v57  ;;  %v525_v20 = vsel %vm457_vm7, %v465_v55, %v462_v47  ;;  %v536_v21 = vsel %vm460_vm6, %v465_v55, %v535_v17  ;;  %v547_v22 = vsel %vm463_vm5, %v465_v55, %v546_v18 }
  0xf4   : > { %v439_v58 = vpop.f32.mrf.mxu0 }
  0xf5   : > { %v440_v60 = vadd.f32 %v1064_v33, %v439_v58 }
  0xf7   : > { %v468_v63 = vrot.slane %v440_v60, 3 }
  0xf9   : > { %v494_v1 = vsel %vm475_vm1, %v468_v63, %v493_v0  ;;  %v483_v9 = vsel %vm472_vm2, %v468_v63, %v482_v7  ;;  %v470_v23 = vsel %vm469_vm3, %v468_v63, %v467_v19  ;;  %v515_v26 = vsel %vm457_vm7, %v468_v63, %v465_v55 }
  0xfa   : > { %499 = vst [vmem:[#allocation2 + $0xe] sm:$0xfc] %v494_v1  ;;  %v526_v27 = vsel %vm460_vm6, %v468_v63, %v525_v20  ;;  %v537_v34 = vsel %vm463_vm5, %v468_v63, %v536_v21  ;;  %v548_v38 = vsel %vm466_vm4, %v468_v63, %v547_v22 }
  0xfc   : > { %v442_v3 = vpop.f32.mrf.mxu0 }
  0xfd   : > { %v443_v5 = vadd.f32 %v1064_v33, %v442_v3 }
  0xff   : > { %v471_v8 = vrot.slane %v443_v5, 2 }
 0x101   : > { %v484_v10 = vsel %vm475_vm1, %v471_v8, %v483_v9  ;;  %v473_v28 = vsel %vm472_vm2, %v471_v8, %v470_v23  ;;  %v505_v29 = vsel %vm457_vm7, %v471_v8, %v468_v63  ;;  %v516_v30 = vsel %vm460_vm6, %v471_v8, %v515_v26 }
 0x102   : > { %488 = vst [vmem:[#allocation2 + $0x7] sm:$0xfe] %v484_v10  ;;  %v527_v35 = vsel %vm463_vm5, %v471_v8, %v526_v27  ;;  %v538_v39 = vsel %vm466_vm4, %v471_v8, %v537_v34  ;;  %v549_v41 = vsel %vm469_vm3, %v471_v8, %v548_v38 }
 0x104   : > { %v445_v13 = vpop.f32.mrf.mxu0 }
 0x105   : > { %v446_v16 = vadd.f32 %v1064_v33, %v445_v13 }
 0x107   : > { %v474_v24 = vrot.slane %v446_v16, 1 }
 0x109   : > { %v476_v31 = vsel %vm475_vm1, %v474_v24, %v473_v28  ;;  %489 = vst [vmem:[#allocation2 + $0xf] sm:$0x1] %v474_v24  ;;  %v495_v32 = vsel %vm457_vm7, %v474_v24, %v471_v8  ;;  %v506_v33 = vsel %vm460_vm6, %v474_v24, %v505_v29  ;;  %v517_v36 = vsel %vm463_vm5, %v474_v24, %v516_v30 }
 0x10a   : > { %v593_v37 = vadd.f32 %v590_v25, %v476_v31  ;;  %500 = vst [vmem:[#allocation2 + $0x16] sm:$0x3] %v495_v32  ;;  %v528_v40 = vsel %vm466_vm4, %v474_v24, %v527_v35  ;;  %v539_v42 = vsel %vm469_vm3, %v474_v24, %v538_v39  ;;  %v550_v43 = vsel %vm472_vm2, %v474_v24, %v549_v41 }
 0x10b   : > { %511 = vst [vmem:[#allocation2 + $0x1d] sm:$0x7] %v506_v33 }
 0x10c   : > { %1065 = vtanh.f32 %v593_v37  ;;  %522 = vst [vmem:[#allocation2 + $0x24] sm:$0xf] %v517_v36 }
 0x10d   : > { %533 = vst [vmem:[#allocation2 + $0x2b] sm:$0x1f] %v528_v40 }
 0x10e   : > { %544 = vst [vmem:[#allocation2 + $0x32] sm:$0x3f] %v539_v42 }
 0x10f   : > { %555 = vst [vmem:[#allocation2 + $0x39] sm:$0x7f] %v550_v43 }
 0x110   : > { %v595_v45 = vld [vmem:[#allocation2 + $0x8] sm:$0xff] }
 0x111   : > { %v618_v49 = vld [vmem:[#allocation2 + $0x10] sm:$0xff] }
 0x112   : > { %v1066_v44 = vpop.eup %1065  ;;  %v641_v53 = vld [vmem:[#allocation2 + $0x18] sm:$0xff] }
 0x113   : > { %612 = vmatmul.f32.vlgmr.msra.gmra.mxu2 %v1066_v44  ;;  %v664_v57 = vld [vmem:[#allocation2 + $0x20] sm:$0xff] }
 0x114   : > { %v687_v61 = vld [vmem:[#allocation2 + $0x28] sm:$0xff] }
 0x115   : > { %v710_v1 = vld [vmem:[#allocation2 + $0x30] sm:$0xff] }
 0x116   : > { %v733_v5 = vld [vmem:[#allocation2 + $0x38] sm:$0xff] }
 0x196   : > { %v613_v46 = vpop.f32.mrf.mxu2 }
 0x197   : > { %v616_v47 = vadd.f32 %v613_v46, %v595_v45 }
 0x199   : > { %1067 = vtanh.f32 %v616_v47 }
 0x19f   : > { %v1068_v48 = vpop.eup %1067 }
 0x1a0   : > { %635 = vmatmul.f32.vlgmr.msra.gmra.mxu3 %v1068_v48 }
 0x223   : > { %v636_v50 = vpop.f32.mrf.mxu3 }
 0x224   : > { %v639_v51 = vadd.f32 %v636_v50, %v618_v49 }
 0x226   : > { %1069 = vtanh.f32 %v639_v51 }
 0x22c   : > { %v1070_v52 = vpop.eup %1069 }
 0x22d   : > { %658 = vmatmul.f32.vlgmr.msrb.gmra.mxu1 %v1070_v52 }
 0x2aa   : > { %v659_v54 = vpop.f32.mrf.mxu1 }
 0x2ab   : > { %v662_v55 = vadd.f32 %v659_v54, %v641_v53 }
 0x2ad   : > { %1071 = vtanh.f32 %v662_v55 }
 0x2b3   : > { %v1072_v56 = vpop.eup %1071 }
 0x2b4   : > { %681 = vmatmul.f32.vlgmr.msrb.gmra.mxu2 %v1072_v56 }
 0x337   : > { %v682_v58 = vpop.f32.mrf.mxu2 }
 0x338   : > { %v685_v59 = vadd.f32 %v682_v58, %v664_v57 }
 0x33a   : > { %1073 = vtanh.f32 %v685_v59 }
 0x340   : > { %v1074_v60 = vpop.eup %1073 }
 0x341   : > { %704 = vmatmul.f32.vlgmr.msrb.gmra.mxu3 %v1074_v60 }
 0x3c4   : > { %v705_v62 = vpop.f32.mrf.mxu3 }
 0x3c5   : > { %v708_v63 = vadd.f32 %v705_v62, %v687_v61 }
 0x3c7   : > { %1075 = vtanh.f32 %v708_v63 }
 0x3cd   : > { %v1076_v0 = vpop.eup %1075 }
 0x3ce   : > { %727 = vmatmul.f32.vlgmr.msrb.gmra.mxu0 %v1076_v0 }
 0x44b   : > { %v728_v2 = vpop.f32.mrf.mxu0 }
 0x44c   : > { %v731_v3 = vadd.f32 %v728_v2, %v710_v1 }
 0x44e   : > { %1077 = vtanh.f32 %v731_v3 }
 0x454   : > { %v1078_v4 = vpop.eup %1077 }
 0x455   : > { %750 = vmatmul.f32.vlgmr.msra.gmra.mxu1 %v1078_v4 }
 0x4d2   : > { %v751_v6 = vpop.f32.mrf.mxu1 }
 0x4d3   : > { %v754_v7 = vadd.f32 %v751_v6, %v733_v5 }
 0x4d5   : > { %1079 = vtanh.f32 %v754_v7 }
 0x4db   : > { %v1080_v8 = vpop.eup %1079 }
 0x4dc   : > { %756 = vst [vmem:[#allocation3] sm:$0xff] %v1080_v8 }
 0x4dd PF: > { %v773_v9 = vld [vmem:[%s1474_s2 + $0x78] sm:$0xff]  ;;  %v772_v10 = vld [vmem:[%s1474_s2 + $0x70] sm:$0xff]  ;;  %v771_v11 = vld [vmem:[%s1474_s2 + $0x68] sm:$0xff]  ;;  %s964_s10 = sshll.u32 %s1284_s24, 3  ;;  %s814_s0 = sshll.u32 %s1489_s18, 4  ;;  %s815_s0 = int_to_ptr.vmem [resolvable:$true] %s814_s0 }
 0x4de   : > { %778 = vmatpush.msra.mxu0 %v773_v9  ;;  %v770_v12 = vld [vmem:[%s1474_s2 + $0x60] sm:$0xff]  ;;  %v769_v13 = vld [vmem:[%s1474_s2 + $0x58] sm:$0xff]  ;;  %v768_v14 = vld [vmem:[%s1474_s2 + $0x50] sm:$0xff]  ;;  %s812_s14 = scalar_lea.hbm %s1779_s6, %s964_s10  ;;  %s1222_s9 = scalar_lea.hbm %s1779_s6, 16 }
 0x4df   : > { %v767_v15 = vld [vmem:[%s1474_s2 + $0x48] sm:$0xff]  ;;  %v766_v16 = vld [vmem:[%s1474_s2 + $0x40] sm:$0xff]  ;;  %v765_v17 = vld [vmem:[%s1474_s2 + $0x38] sm:$0xff]  ;;  %s816_s1 = sshll.u32 %s812_s14, 4  ;;  %s817_s1 = int_to_ptr.hbm [resolvable:$true] %s816_s1 }
 0x4e0   : > { %779 = vmatpush.msra.mxu0 %v772_v10  ;;  %v764_v18 = vld [vmem:[%s1474_s2 + $0x30] sm:$0xff]  ;;  %v763_v19 = vld [vmem:[%s1474_s2 + $0x28] sm:$0xff]  ;;  %v762_v20 = vld [vmem:[%s1474_s2 + $0x20] sm:$0xff]  ;;  %s1216_s29 = sshra.s32 %s817_s1, 4  ;;  %s1217_s29 = int_to_ptr.hbm [resolvable:$true] %s1216_s29 }
 0x4e1   : > { %v761_v21 = vld [vmem:[%s1474_s2 + $0x18] sm:$0xff]  ;;  %v760_v22 = vld [vmem:[%s1474_s2 + $0x10] sm:$0xff]  ;;  %v759_v23 = vld [vmem:[%s1474_s2 + $0x8] sm:$0xff]  ;;  %s1218_s24 = scalar_lea.hbm %s1217_s29, 8  ;;  %p1223_p13 = scmp.lt.s32.totalorder %s1217_s29, %s1779_s6 }
 0x4e2   : > { %780 = vmatpush.msra.mxu0 %v771_v11  ;;  %v758_v24 = vld [vmem:[%s1474_s2] sm:$0xff]  ;;  %v1081_v26 = vld [vmem:[%s357_s17] ss:$0 sm:$0xff]  ;;  %s800_s2 = scalar_lea.sflag [#allocation6], %s1470_s19  ;;  %p1219_p4 = scmp.ne.s32.totalorder %s1217_s29, %s1218_s24 }
 0x4e3   : > { %v757_v25 = vld [vmem:[#allocation3] sm:$0xff]  ;;  %p1224_p0 = scmp.lt.s32.totalorder %s1222_s9, %s1218_s24 }
 0x4e4   : > { %781 = vmatpush.msra.mxu0 %v770_v12  ;;  %p1220_p11 = pnand %p1219_p4, %p1440_p5 }
 0x4e5   : > { %p1225_p3 = por %p1224_p0, %p1223_p13 }
 0x4e6   : > { %782 = vmatpush.msra.mxu0 %v769_v13  ;;  %p1221_p12 = pneg %p1220_p11 }
 0x4e8   : > { %783 = vmatpush.msra.mxu0 %v768_v14  ;;  %p1226_p7 = pnand %p1225_p3, %p1221_p12 }
 0x4ea   : > { %784 = vmatpush.msra.mxu0 %v767_v15 }
 0x4ec   : > { %785 = vmatpush.msra.mxu0 %v766_v16 }
 0x4ee   : > { %786 = vmatpush.msra.mxu0 %v765_v17 }
 0x4f0   : > { %787 = vmatpush.msra.mxu0 %v764_v18 }
 0x4f2   : > { %788 = vmatpush.msra.mxu0 %v763_v19 }
 0x4f4   : > { %789 = vmatpush.msra.mxu0 %v762_v20 }
 0x4f6   : > { %790 = vmatpush.msra.mxu0 %v761_v21 }
 0x4f8   : > { %791 = vmatpush.msra.mxu0 %v760_v22 }
 0x4fa   : > { %792 = vmatpush.msra.mxu0 %v759_v23 }
 0x4fc   : > { %793 = vmatpush.msra.mxu0 %v758_v24 }
 0x4fd   : > { %794 = vmatmul.f32.vlgmr.msra.gmra.mxu0 %v757_v25 }
 0x57a   : > { %v795_v27 = vpop.f32.mrf.mxu0 }
 0x57b   : > { %v796_v28 = vadd.f32 %v1081_v26, %v795_v27 }
 0x57d   : > { %798 = vst [vmem:[%s1489_s18] sm:$0xff] %v796_v28 }
 0x57e   : > { %1229 = shalt.err (!%p1226_p7)
}
 0x57f   : > { %981 = dma.vmem_to_hbm [thread:$0]  (%p1440_p5), %s815_s0, 128, %s817_s1, %s800_s2  }
 0x580 PF: > { %s828_s19 = sand.u32 1, %s1272_s21   ;;  %p998_p9 = pnand %p945_p10, %p1385_p6 }
 0x581   : > { %s829_s18 = scalar_lea.sflag [#allocation6], %s828_s19 }
 0x582   : > { %p999_p2 = pneg %p998_p9 }
 0x584   : > { %1267 = dma.done.wait (%p999_p2), %s829_s18, 128  }
 0x585   : > { %1269 = vsyncadd (%p999_p2), %s829_s18, 4294967168  ;;  %s24_s26 = sadd.s32 1, %s1292_s26   ;;  %s1800_s15 = sld [smem:[#allocation17_spill]] }
 0x586   : > { %p21_p1 = scmp.ge.s32.totalorder %s24_s26, 4   ;;  %s1801_s21 = smov %s1276_s22 }
 0x587   : > { %s1802_s22 = smov %s1280_s23  ;;  %s1803_s23 = smov %s1449_s11 }
 0x588   : > { %s1804_s24 = smov %s1288_s25  ;;  %23 = sbr.rel (!%p21_p1) target bundleno = 12 (0xc), region = 117 }
 0x58b   : > { %s1805_s25 = smov %s1800_s15 }
 0x58d   :  { %835 = vsyncpa [#allocation5], 1 }
 0x58e   :  { %837 = vsyncpa [#allocation5 + $0x1], 1 }
 0x58f   :  { %838 = vsyncpa [#allocation8], 1 }
 0x590   :  { %839 = vsyncpa [#allocation11], 1 }
 0x591   :  { %841 = vsyncpa [#allocation11 + $0x1], 1 }
 0x592   :  { %842 = vsyncpa [#allocation6], 1 }
 0x593   :  { %844 = vsyncpa [#allocation6 + $0x1], 1 }

</bundles_post_ra>
